<compile_context>
chip_gen: v5e
topology: v5e:2x2
jax: 0.10.0
libtpu: 0.0.40
codegen_flags: <defaults>
</compile_context>

<pallas_src>
import functools

import numpy as np

import jax
import jax.numpy as jnp
from jax.experimental import pallas as pl
from jax.experimental.pallas import tpu as pltpu


def _round_up(n, m):
    return ((n + m - 1) // m) * m


def _make_boundary_masks(H, W):
    """(9, H*W) f32: mask[k][y*W+x] = 1 iff (y+dy, x+dx) is in-bounds, with
    k = (dy+1)*3 + (dx+1), dy,dx in {-1,0,1}.  Computed at trace time."""
    yy, xx = np.meshgrid(np.arange(H), np.arange(W), indexing="ij")
    yy = yy.reshape(-1)
    xx = xx.reshape(-1)
    ms = []
    for dy in (-1, 0, 1):
        for dx in (-1, 0, 1):
            m = ((yy + dy >= 0) & (yy + dy < H) &
                 (xx + dx >= 0) & (xx + dx < W))
            ms.append(m.astype(np.float32))
    return np.stack(ms, axis=0)


def _prep_w3x3(w, cp, dtype):
    """PyTorch (Co, Ci, 3, 3) -> (cp, 9*cp) with layout [co, k*cp + ci]."""
    co, ci, kh, kw = w.shape
    wt = jnp.transpose(w.astype(jnp.float32), (2, 3, 1, 0))       # (3,3,Ci,Co)
    wt = jnp.pad(wt, ((0, 0), (0, 0), (0, cp - ci), (0, cp - co)))
    wt = wt.reshape(kh * kw * cp, cp)                              # [k*cp+ci, co]
    return jnp.transpose(wt).astype(dtype)                         # [co, k*cp+ci]


def _prep_w1x1(w, cp, dtype):
    co, ci = w.shape[0], w.shape[1]
    w2 = w[:, :, 0, 0].astype(jnp.float32)
    return jnp.pad(w2, ((0, cp - co), (0, cp - ci))).astype(dtype)


def _prep_bias(b, cp):
    return jnp.pad(b.astype(jnp.float32), (0, cp - b.shape[0])).reshape(cp, 1)


def _pick_group(B, hw, cp, itemsize):
    """How many images to fold into the lane axis per grid step."""
    # Cap the folded lane width so the (9*cp, lanes) tap slab stays a few MB.
    max_lanes = max(hw, (8 << 20) // (9 * cp * itemsize))
    group = max(1, min(B, max_lanes // hw))
    if B > 1:
        # Keep >=2 parallel grid steps when possible (v7x megacore).
        group = min(group, max(1, B // 2))
    while B % group:
        group -= 1
    return group


def _const_spec(shape, single_buffer):
    """BlockSpec for a grid-invariant operand (same block every grid step)."""
    if single_buffer:
        # Large weights: don't double-buffer what never changes (halves their
        # VMEM footprint at the CE-Net bottleneck).  Fall back silently if this
        # jax version has no pipeline_mode.
        try:
            return pl.BlockSpec(shape, lambda s: (0, 0),
                                pipeline_mode=pl.Buffered(1))
        except (TypeError, AttributeError):
            pass
    return pl.BlockSpec(shape, lambda s: (0, 0))


# ------------------------------ Pallas kernel ------------------------------ #

def _dac_body(x_ref, m_ref, w12_ref, w2_ref, w3_ref, wc_ref,
              b12_ref, b2_ref, b3_ref, bc_ref, o_ref, slab_ref,
              *, W, C, compute_dtype):
    _, cp, lanes = x_ref.shape
    x = x_ref[0]                       # (cp, lanes) f32, lane axis = packed H*W
    masks = m_ref[...]                 # (9, lanes) f32 boundary masks

    def build_taps(t):
        # t: (cp, lanes) f32.  Writes the 9-tap "im2col" slab (compute_dtype)
        # into the single reused VMEM scratch.  Invariant: roll wrap-around
        # (incl. across packed images) only lands on masked-out positions.
        for k in range(9):
            dy, dx = k // 3 - 1, k % 3 - 1
            off = dy * W + dx                        # flat source offset
            if off == 0:
                part = t
            else:
                part = pltpu.roll(t, (-off) % lanes, axis=1) * masks[k:k + 1, :]
            slab_ref[k * cp:(k + 1) * cp, :] = part.astype(compute_dtype)

    def mm(w_ref, b_ref):
        # one MXU matmul per 3x3 conv (bf16 inputs, f32 accumulation)
        y = jnp.dot(w_ref[...], slab_ref[...],
                    preferred_element_type=jnp.float32)
        return y if b_ref is None else y + b_ref[...]

    wc = wc_ref[...]

    def conv1(t):
        y = jnp.dot(wc, t.astype(compute_dtype),
                    preferred_element_type=jnp.float32)
        return y if bc_ref is None else y + bc_ref[...]

    relu = lambda t: jnp.maximum(t, 0.0)

    # dilate1(x) and dilate2(x) share one tap slab -> one fused matmul.
    build_taps(x)
    ab = mm(w12_ref, b12_ref)                       # (2*cp, lanes)
    a, bb = ab[:cp], ab[cp:]                        # dilate1(x), dilate2(x)
    acc = x + relu(a) + relu(conv1(bb))             # x + d1 + d2 (bb dies here)

    build_taps(a)                                   # taps of dilate1(x)
    cc = mm(w2_ref, b2_ref)                         # dilate2(dilate1(x))
    acc = acc + relu(conv1(cc))                     # + d3

    build_taps(cc)
    ee = mm(w3_ref, b3_ref)                         # dilate3(dilate2(dilate1(x)))
    acc = acc + relu(conv1(ee))                     # + d4

    o_ref[0] = acc[:C, :]                           # only the real channels


# -------------------------------- wrapper ---------------------------------- #

def dac_block_forward(x, params, *, compute_dtype=jnp.bfloat16):
    """DACblock_without_atrous forward.  x: (B, C, H, W) (NCHW).

    params: dict with "w1","w2","w3" (C,C,3,3) and "wc" (C,C,1,1); optional
    biases "b1","b2","b3","bc" (the PyTorch module zeroes them at init, so they
    may simply be omitted -> the kernel skips the bias loads/adds entirely).
    """
    B, C, H, W = x.shape
    hw = H * W
    itemsize = np.dtype(compute_dtype).itemsize
    sub = 8 * (4 // itemsize)                 # sublane packing: 8 (f32) / 16 (bf16)
    cp = _round_up(max(C, sub), sub)

    group = _pick_group(B, hw, cp, itemsize)  # images folded per grid step
    n_steps = B // group
    lanes = group * hw

    # (B, C, H*W) -> (n_steps, cp, group*H*W): images packed along lanes.
    xf = x.astype(jnp.float32).reshape(n_steps, group, C, hw)
    xf = xf.transpose(0, 2, 1, 3).reshape(n_steps, C, lanes)
    xf = jnp.pad(xf, ((0, 0), (0, cp - C), (0, 0)))

    # Per-image boundary mask, tiled across the packed images.
    masksf = jnp.asarray(np.tile(_make_boundary_masks(H, W), (1, group)),
                         dtype=jnp.float32)

    w1m = _prep_w3x3(params["w1"], cp, compute_dtype)
    w2m = _prep_w3x3(params["w2"], cp, compute_dtype)
    w3m = _prep_w3x3(params["w3"], cp, compute_dtype)
    w12 = jnp.concatenate([w1m, w2m], axis=0)          # fused [w1; w2]
    wcm = _prep_w1x1(params["wc"], cp, compute_dtype)

    has_bias = any(params.get(k) is not None for k in ("b1", "b2", "b3", "bc"))
    bias_args, bias_specs = [], []
    if has_bias:
        def getb(name):
            b = params.get(name)
            return jnp.zeros((C,), jnp.float32) if b is None else b
        b1 = _prep_bias(getb("b1"), cp)
        b2 = _prep_bias(getb("b2"), cp)
        b3 = _prep_bias(getb("b3"), cp)
        bc = _prep_bias(getb("bc"), cp)
        b12 = jnp.concatenate([b1, b2], axis=0)
        bias_args = [b12, b2, b3, bc]

    # Single-buffer the grid-invariant weights once they are big enough to
    # matter (C=512 -> ~19 MB bf16); at toy sizes keep the default pipeline.
    weight_bytes = (w12.size + w2m.size + w3m.size + wcm.size) * itemsize
    single_buffer = weight_bytes > (4 << 20)

    if has_bias:
        bias_specs = [_const_spec(tuple(b.shape), single_buffer)
                      for b in bias_args]

    in_specs = ([pl.BlockSpec((1, cp, lanes), lambda s: (s, 0, 0)),
                 _const_spec((9, lanes), single_buffer),
                 _const_spec((2 * cp, 9 * cp), single_buffer),
                 _const_spec((cp, 9 * cp), single_buffer),
                 _const_spec((cp, 9 * cp), single_buffer),
                 _const_spec((cp, cp), single_buffer)]
                + bias_specs)

    # Explicit VMEM budget (the defaults are 16/32 MiB; the C=512 bottleneck
    # needs ~27 MB with bf16 + single-buffered weights).
    slab_bytes = 9 * cp * lanes * itemsize
    act_bytes = 8 * cp * lanes * 4
    io_bytes = 2 * cp * lanes * 4 + 2 * C * lanes * 4
    est = (weight_bytes * (1 if single_buffer else 2)
           + slab_bytes + act_bytes + io_bytes + 9 * lanes * 4)
    vmem_limit = int(min(100 << 20, max(32 << 20, 2 * est)))

    body = functools.partial(_dac_body, W=W, C=C, compute_dtype=compute_dtype)
    if has_bias:
        def kernel(x_ref, m_ref, w12_ref, w2_ref, w3_ref, wc_ref,
                   b12_ref, b2_ref, b3_ref, bc_ref, o_ref, slab_ref):
            body(x_ref, m_ref, w12_ref, w2_ref, w3_ref, wc_ref,
                 b12_ref, b2_ref, b3_ref, bc_ref, o_ref, slab_ref)
    else:
        def kernel(x_ref, m_ref, w12_ref, w2_ref, w3_ref, wc_ref,
                   o_ref, slab_ref):
            body(x_ref, m_ref, w12_ref, w2_ref, w3_ref, wc_ref,
                 None, None, None, None, o_ref, slab_ref)

    out = pl.pallas_call(
        kernel,
        grid=(n_steps,),
        in_specs=in_specs,
        out_specs=pl.BlockSpec((1, C, lanes), lambda s: (s, 0, 0)),
        out_shape=jax.ShapeDtypeStruct((n_steps, C, lanes), jnp.float32),
        scratch_shapes=[pltpu.VMEM((9 * cp, lanes), compute_dtype)],
        compiler_params=pltpu.CompilerParams(
            dimension_semantics=("parallel",),
            vmem_limit_bytes=vmem_limit),
    )(xf, masksf, w12, w2m, w3m, wcm, *bias_args)

    out = out.reshape(n_steps, C, group, hw).transpose(0, 2, 1, 3)
    return out.reshape(B, C, H, W).astype(x.dtype)


# --------------------------- pure-JAX references ---------------------------- #

def dac_block_reference(x, params, compute_dtype=None):
    """Pure-JAX reference.  If compute_dtype is given, every conv's inputs and
    weights are rounded to it (f32 accumulation), matching the kernel's
    rounding points exactly; with None it is the full-f32 reference."""
    dn = ("NCHW", "OIHW", "NCHW")
    prec = jax.lax.Precision.HIGHEST

    def cast(t):
        return t if compute_dtype is None else t.astype(compute_dtype)

    def bias(name):
        b = params.get(name)
        return 0.0 if b is None else b.astype(jnp.float32)[None, :, None, None]

    def c3(t, w, bname):
        y = jax.lax.conv_general_dilated(
            cast(t), cast(w), (1, 1), ((1, 1), (1, 1)), dimension_numbers=dn,
            precision=prec, preferred_element_type=jnp.float32)
        return y + bias(bname)

    def c1(t):
        y = jax.lax.conv_general_dilated(
            cast(t), cast(params["wc"]), (1, 1), "VALID", dimension_numbers=dn,
            precision=prec, preferred_element_type=jnp.float32)
        return y + bias("bc")

    relu = lambda t: jnp.maximum(t, 0.0)
    a = c3(x, params["w1"], "b1")           # dilate1(x)
    bb = c3(x, params["w2"], "b2")          # dilate2(x)
    cc = c3(a, params["w2"], "b2")          # dilate2(dilate1(x))
    ee = c3(cc, params["w3"], "b3")         # dilate3(dilate2(dilate1(x)))
    return x + relu(a) + relu(c1(bb)) + relu(c1(cc)) + relu(c1(ee))


if __name__ == "__main__":
    key = jax.random.PRNGKey(0)
    C, H, W = 4, 16, 16
    k1, k2, k3, k4, kx = jax.random.split(key, 5)

    def conv_weight(k, co, ci, kh, kw):
        bound = 1.0 / np.sqrt(ci * kh * kw)
        return jax.random.uniform(k, (co, ci, kh, kw), jnp.float32,
                                  -bound, bound)

    # All conv biases are zeroed in the module's __init__ (m.bias.data.zero_()),
    # so they are omitted here -> the kernel's no-bias fast path is used.
    params = {
        "w1": conv_weight(k1, C, C, 3, 3),
        "w2": conv_weight(k2, C, C, 3, 3),
        "w3": conv_weight(k3, C, C, 3, 3),
        "wc": conv_weight(k4, C, C, 1, 1),
    }

    fwd = jax.jit(dac_block_forward)

    # B=2: one image per grid step (2 parallel steps).
    # B=4: two images folded into the lane axis per step (exercises the
    #      cross-image roll/mask invariant).
    for B in (2, 4):
        x = jax.random.normal(jax.random.fold_in(kx, B), (B, C, H, W),
                              jnp.float32)
        out = fwd(x, params)
        jax.block_until_ready(out)
        assert out.shape == (B, C, H, W), out.shape
        assert bool(jnp.all(jnp.isfinite(out)))

        # Tight check vs a reference with the SAME bf16 rounding points:
        # any mask/offset/layout bug would show up as O(0.1-1) error here.
        ref_bf16 = dac_block_reference(x, params, compute_dtype=jnp.bfloat16)
        err = float(jnp.max(jnp.abs(out - ref_bf16)))
        assert err < 5e-3, f"B={B}: err vs bf16-matched reference = {err}"

        # Loose check vs the full-f32 reference: bounded by the bf16
        # quantization of the MXU inputs.
        ref_f32 = dac_block_reference(x, params)
        err32 = float(jnp.max(jnp.abs(out - ref_f32)))
        assert err32 < 3e-2, f"B={B}: err vs f32 reference = {err32}"

    print("KERNEL_OK")
</pallas_src>

<mosaic_0001>
module attributes {stable_mosaic.version = 11 : i64} {
  func.func @kernel(%arg0: i32, %arg1: memref<1x16x256xf32, #tpu.memory_space<vmem>>, %arg2: memref<9x256xf32, #tpu.memory_space<vmem>>, %arg3: memref<32x144xbf16, #tpu.memory_space<vmem>>, %arg4: memref<16x144xbf16, #tpu.memory_space<vmem>>, %arg5: memref<16x144xbf16, #tpu.memory_space<vmem>>, %arg6: memref<16x16xbf16, #tpu.memory_space<vmem>>, %arg7: memref<1x4x256xf32, #tpu.memory_space<vmem>>, %arg8: memref<144x256xbf16, #tpu.memory_space<vmem>>) attributes {dimension_semantics = [#tpu.dimension_semantics<parallel>], iteration_bounds = array<i64: 2>, scalar_prefetch = 0 : i64, scratch_operands = 1 : i64, tpu.core_type = #tpu.core_type<tc>, window_params = [{transform_indices = @transform_0, window_bounds = array<i64: 1, 16, 256>}, {pipeline_mode = #tpu.pipeline_mode<synchronous>, transform_indices = @transform_1, window_bounds = array<i64: 9, 256>}, {pipeline_mode = #tpu.pipeline_mode<synchronous>, transform_indices = @transform_2, window_bounds = array<i64: 32, 144>}, {pipeline_mode = #tpu.pipeline_mode<synchronous>, transform_indices = @transform_3, window_bounds = array<i64: 16, 144>}, {pipeline_mode = #tpu.pipeline_mode<synchronous>, transform_indices = @transform_4, window_bounds = array<i64: 16, 144>}, {pipeline_mode = #tpu.pipeline_mode<synchronous>, transform_indices = @transform_5, window_bounds = array<i64: 16, 16>}, {transform_indices = @transform_6, window_bounds = array<i64: 1, 4, 256>}]} {
    %c0 = arith.constant 0 : index
    %c0_0 = arith.constant 0 : index
    %c0_1 = arith.constant 0 : index
    %0 = vector.load %arg1[%c0, %c0_0, %c0_1] : memref<1x16x256xf32, #tpu.memory_space<vmem>>, vector<1x16x256xf32>
    %1 = vector.shape_cast %0 : vector<1x16x256xf32> to vector<16x256xf32>
    %c0_2 = arith.constant 0 : index
    %c0_3 = arith.constant 0 : index
    %2 = vector.load %arg2[%c0_2, %c0_3] : memref<9x256xf32, #tpu.memory_space<vmem>>, vector<9x256xf32>
    %c0_4 = arith.constant 0 : index
    %c0_5 = arith.constant 0 : index
    %3 = vector.load %arg6[%c0_4, %c0_5] : memref<16x16xbf16, #tpu.memory_space<vmem>>, vector<16x16xbf16>
    %c17_i32 = arith.constant 17 : i32
    %4 = tpu.dynamic_rotate %1 by %c17_i32 dim 1 : vector<16x256xf32>, i32 -> vector<16x256xf32>
    %5 = vector.extract_strided_slice %2 {offsets = [0, 0], sizes = [1, 256], strides = [1, 1]} : vector<9x256xf32> to vector<1x256xf32>
    %6 = vector.broadcast %5 : vector<1x256xf32> to vector<16x256xf32>
    %7 = arith.mulf %4, %6 : vector<16x256xf32>
    %8 = arith.truncf %7 : vector<16x256xf32> to vector<16x256xbf16>
    %c0_6 = arith.constant 0 : index
    %c0_7 = arith.constant 0 : index
    %9 = vector.load %arg8[%c0_6, %c0_7] : memref<144x256xbf16, #tpu.memory_space<vmem>>, vector<16x256xbf16>
    tpu.vector_store %arg8[%c0_6, %c0_7], %8 {strides = array<i32>} : memref<144x256xbf16, #tpu.memory_space<vmem>>, vector<16x256xbf16>,
    %c16_i32 = arith.constant 16 : i32
    %10 = tpu.dynamic_rotate %1 by %c16_i32 dim 1 : vector<16x256xf32>, i32 -> vector<16x256xf32>
    %11 = vector.extract_strided_slice %2 {offsets = [1, 0], sizes = [1, 256], strides = [1, 1]} : vector<9x256xf32> to vector<1x256xf32>
    %12 = vector.broadcast %11 : vector<1x256xf32> to vector<16x256xf32>
    %13 = arith.mulf %10, %12 : vector<16x256xf32>
    %14 = arith.truncf %13 : vector<16x256xf32> to vector<16x256xbf16>
    %c16 = arith.constant 16 : index
    %c0_8 = arith.constant 0 : index
    %15 = vector.load %arg8[%c16, %c0_8] : memref<144x256xbf16, #tpu.memory_space<vmem>>, vector<16x256xbf16>
    tpu.vector_store %arg8[%c16, %c0_8], %14 {strides = array<i32>} : memref<144x256xbf16, #tpu.memory_space<vmem>>, vector<16x256xbf16>,
    %c15_i32 = arith.constant 15 : i32
    %16 = tpu.dynamic_rotate %1 by %c15_i32 dim 1 : vector<16x256xf32>, i32 -> vector<16x256xf32>
    %17 = vector.extract_strided_slice %2 {offsets = [2, 0], sizes = [1, 256], strides = [1, 1]} : vector<9x256xf32> to vector<1x256xf32>
    %18 = vector.broadcast %17 : vector<1x256xf32> to vector<16x256xf32>
    %19 = arith.mulf %16, %18 : vector<16x256xf32>
    %20 = arith.truncf %19 : vector<16x256xf32> to vector<16x256xbf16>
    %c32 = arith.constant 32 : index
    %c0_9 = arith.constant 0 : index
    %21 = vector.load %arg8[%c32, %c0_9] : memref<144x256xbf16, #tpu.memory_space<vmem>>, vector<16x256xbf16>
    tpu.vector_store %arg8[%c32, %c0_9], %20 {strides = array<i32>} : memref<144x256xbf16, #tpu.memory_space<vmem>>, vector<16x256xbf16>,
    %c1_i32 = arith.constant 1 : i32
    %22 = tpu.dynamic_rotate %1 by %c1_i32 dim 1 : vector<16x256xf32>, i32 -> vector<16x256xf32>
    %23 = vector.extract_strided_slice %2 {offsets = [3, 0], sizes = [1, 256], strides = [1, 1]} : vector<9x256xf32> to vector<1x256xf32>
    %24 = vector.broadcast %23 : vector<1x256xf32> to vector<16x256xf32>
    %25 = arith.mulf %22, %24 : vector<16x256xf32>
    %26 = arith.truncf %25 : vector<16x256xf32> to vector<16x256xbf16>
    %c48 = arith.constant 48 : index
    %c0_10 = arith.constant 0 : index
    %27 = vector.load %arg8[%c48, %c0_10] : memref<144x256xbf16, #tpu.memory_space<vmem>>, vector<16x256xbf16>
    tpu.vector_store %arg8[%c48, %c0_10], %26 {strides = array<i32>} : memref<144x256xbf16, #tpu.memory_space<vmem>>, vector<16x256xbf16>,
    %28 = arith.truncf %1 : vector<16x256xf32> to vector<16x256xbf16>
    %c64 = arith.constant 64 : index
    %c0_11 = arith.constant 0 : index
    %29 = vector.load %arg8[%c64, %c0_11] : memref<144x256xbf16, #tpu.memory_space<vmem>>, vector<16x256xbf16>
    tpu.vector_store %arg8[%c64, %c0_11], %28 {strides = array<i32>} : memref<144x256xbf16, #tpu.memory_space<vmem>>, vector<16x256xbf16>,
    %c255_i32 = arith.constant 255 : i32
    %30 = tpu.dynamic_rotate %1 by %c255_i32 dim 1 : vector<16x256xf32>, i32 -> vector<16x256xf32>
    %31 = vector.extract_strided_slice %2 {offsets = [5, 0], sizes = [1, 256], strides = [1, 1]} : vector<9x256xf32> to vector<1x256xf32>
    %32 = vector.broadcast %31 : vector<1x256xf32> to vector<16x256xf32>
    %33 = arith.mulf %30, %32 : vector<16x256xf32>
    %34 = arith.truncf %33 : vector<16x256xf32> to vector<16x256xbf16>
    %c80 = arith.constant 80 : index
    %c0_12 = arith.constant 0 : index
    %35 = vector.load %arg8[%c80, %c0_12] : memref<144x256xbf16, #tpu.memory_space<vmem>>, vector<16x256xbf16>
    tpu.vector_store %arg8[%c80, %c0_12], %34 {strides = array<i32>} : memref<144x256xbf16, #tpu.memory_space<vmem>>, vector<16x256xbf16>,
    %c241_i32 = arith.constant 241 : i32
    %36 = tpu.dynamic_rotate %1 by %c241_i32 dim 1 : vector<16x256xf32>, i32 -> vector<16x256xf32>
    %37 = vector.extract_strided_slice %2 {offsets = [6, 0], sizes = [1, 256], strides = [1, 1]} : vector<9x256xf32> to vector<1x256xf32>
    %38 = vector.broadcast %37 : vector<1x256xf32> to vector<16x256xf32>
    %39 = arith.mulf %36, %38 : vector<16x256xf32>
    %40 = arith.truncf %39 : vector<16x256xf32> to vector<16x256xbf16>
    %c96 = arith.constant 96 : index
    %c0_13 = arith.constant 0 : index
    %41 = vector.load %arg8[%c96, %c0_13] : memref<144x256xbf16, #tpu.memory_space<vmem>>, vector<16x256xbf16>
    tpu.vector_store %arg8[%c96, %c0_13], %40 {strides = array<i32>} : memref<144x256xbf16, #tpu.memory_space<vmem>>, vector<16x256xbf16>,
    %c240_i32 = arith.constant 240 : i32
    %42 = tpu.dynamic_rotate %1 by %c240_i32 dim 1 : vector<16x256xf32>, i32 -> vector<16x256xf32>
    %43 = vector.extract_strided_slice %2 {offsets = [7, 0], sizes = [1, 256], strides = [1, 1]} : vector<9x256xf32> to vector<1x256xf32>
    %44 = vector.broadcast %43 : vector<1x256xf32> to vector<16x256xf32>
    %45 = arith.mulf %42, %44 : vector<16x256xf32>
    %46 = arith.truncf %45 : vector<16x256xf32> to vector<16x256xbf16>
    %c112 = arith.constant 112 : index
    %c0_14 = arith.constant 0 : index
    %47 = vector.load %arg8[%c112, %c0_14] : memref<144x256xbf16, #tpu.memory_space<vmem>>, vector<16x256xbf16>
    tpu.vector_store %arg8[%c112, %c0_14], %46 {strides = array<i32>} : memref<144x256xbf16, #tpu.memory_space<vmem>>, vector<16x256xbf16>,
    %c239_i32 = arith.constant 239 : i32
    %48 = tpu.dynamic_rotate %1 by %c239_i32 dim 1 : vector<16x256xf32>, i32 -> vector<16x256xf32>
    %49 = vector.extract_strided_slice %2 {offsets = [8, 0], sizes = [1, 256], strides = [1, 1]} : vector<9x256xf32> to vector<1x256xf32>
    %50 = vector.broadcast %49 : vector<1x256xf32> to vector<16x256xf32>
    %51 = arith.mulf %48, %50 : vector<16x256xf32>
    %52 = arith.truncf %51 : vector<16x256xf32> to vector<16x256xbf16>
    %c128 = arith.constant 128 : index
    %c0_15 = arith.constant 0 : index
    %53 = vector.load %arg8[%c128, %c0_15] : memref<144x256xbf16, #tpu.memory_space<vmem>>, vector<16x256xbf16>
    tpu.vector_store %arg8[%c128, %c0_15], %52 {strides = array<i32>} : memref<144x256xbf16, #tpu.memory_space<vmem>>, vector<16x256xbf16>,
    %c0_16 = arith.constant 0 : index
    %c0_17 = arith.constant 0 : index
    %54 = vector.load %arg3[%c0_16, %c0_17] : memref<32x144xbf16, #tpu.memory_space<vmem>>, vector<32x144xbf16>
    %c0_18 = arith.constant 0 : index
    %c0_19 = arith.constant 0 : index
    %55 = vector.load %arg8[%c0_18, %c0_19] : memref<144x256xbf16, #tpu.memory_space<vmem>>, vector<144x256xbf16>
    %cst = arith.constant dense<0.000000e+00> : vector<32x256xf32>
    %56 = tpu.matmul %54, %55, %cst {dimension_numbers = #tpu.dot_dimension_numbers<[1], [0], [0], [1], [0, 0, 1, 1], [], []>} : vector<32x144xbf16>, vector<144x256xbf16>, vector<32x256xf32> -> vector<32x256xf32>
    %57 = vector.extract_strided_slice %56 {offsets = [0, 0], sizes = [16, 256], strides = [1, 1]} : vector<32x256xf32> to vector<16x256xf32>
    %58 = vector.extract_strided_slice %56 {offsets = [16, 0], sizes = [16, 256], strides = [1, 1]} : vector<32x256xf32> to vector<16x256xf32>
    %cst_20 = arith.constant 0.000000e+00 : f32
    %59 = vector.broadcast %cst_20 : f32 to vector<16x256xf32>
    %60 = arith.maximumf %57, %59 : vector<16x256xf32>
    %61 = arith.addf %1, %60 : vector<16x256xf32>
    %62 = arith.truncf %58 : vector<16x256xf32> to vector<16x256xbf16>
    %cst_21 = arith.constant dense<0.000000e+00> : vector<16x256xf32>
    %63 = tpu.matmul %3, %62, %cst_21 {dimension_numbers = #tpu.dot_dimension_numbers<[1], [0], [0], [1], [0, 0, 1, 1], [], []>} : vector<16x16xbf16>, vector<16x256xbf16>, vector<16x256xf32> -> vector<16x256xf32>
    %cst_22 = arith.constant 0.000000e+00 : f32
    %64 = vector.broadcast %cst_22 : f32 to vector<16x256xf32>
    %65 = arith.maximumf %63, %64 : vector<16x256xf32>
    %66 = arith.addf %61, %65 : vector<16x256xf32>
    %c17_i32_23 = arith.constant 17 : i32
    %67 = tpu.dynamic_rotate %57 by %c17_i32_23 dim 1 : vector<16x256xf32>, i32 -> vector<16x256xf32>
    %68 = vector.extract_strided_slice %2 {offsets = [0, 0], sizes = [1, 256], strides = [1, 1]} : vector<9x256xf32> to vector<1x256xf32>
    %69 = vector.broadcast %68 : vector<1x256xf32> to vector<16x256xf32>
    %70 = arith.mulf %67, %69 : vector<16x256xf32>
    %71 = arith.truncf %70 : vector<16x256xf32> to vector<16x256xbf16>
    %c0_24 = arith.constant 0 : index
    %c0_25 = arith.constant 0 : index
    %72 = vector.load %arg8[%c0_24, %c0_25] : memref<144x256xbf16, #tpu.memory_space<vmem>>, vector<16x256xbf16>
    tpu.vector_store %arg8[%c0_24, %c0_25], %71 {strides = array<i32>} : memref<144x256xbf16, #tpu.memory_space<vmem>>, vector<16x256xbf16>,
    %c16_i32_26 = arith.constant 16 : i32
    %73 = tpu.dynamic_rotate %57 by %c16_i32_26 dim 1 : vector<16x256xf32>, i32 -> vector<16x256xf32>
    %74 = vector.extract_strided_slice %2 {offsets = [1, 0], sizes = [1, 256], strides = [1, 1]} : vector<9x256xf32> to vector<1x256xf32>
    %75 = vector.broadcast %74 : vector<1x256xf32> to vector<16x256xf32>
    %76 = arith.mulf %73, %75 : vector<16x256xf32>
    %77 = arith.truncf %76 : vector<16x256xf32> to vector<16x256xbf16>
    %c16_27 = arith.constant 16 : index
    %c0_28 = arith.constant 0 : index
    %78 = vector.load %arg8[%c16_27, %c0_28] : memref<144x256xbf16, #tpu.memory_space<vmem>>, vector<16x256xbf16>
    tpu.vector_store %arg8[%c16_27, %c0_28], %77 {strides = array<i32>} : memref<144x256xbf16, #tpu.memory_space<vmem>>, vector<16x256xbf16>,
    %c15_i32_29 = arith.constant 15 : i32
    %79 = tpu.dynamic_rotate %57 by %c15_i32_29 dim 1 : vector<16x256xf32>, i32 -> vector<16x256xf32>
    %80 = vector.extract_strided_slice %2 {offsets = [2, 0], sizes = [1, 256], strides = [1, 1]} : vector<9x256xf32> to vector<1x256xf32>
    %81 = vector.broadcast %80 : vector<1x256xf32> to vector<16x256xf32>
    %82 = arith.mulf %79, %81 : vector<16x256xf32>
    %83 = arith.truncf %82 : vector<16x256xf32> to vector<16x256xbf16>
    %c32_30 = arith.constant 32 : index
    %c0_31 = arith.constant 0 : index
    %84 = vector.load %arg8[%c32_30, %c0_31] : memref<144x256xbf16, #tpu.memory_space<vmem>>, vector<16x256xbf16>
    tpu.vector_store %arg8[%c32_30, %c0_31], %83 {strides = array<i32>} : memref<144x256xbf16, #tpu.memory_space<vmem>>, vector<16x256xbf16>,
    %c1_i32_32 = arith.constant 1 : i32
    %85 = tpu.dynamic_rotate %57 by %c1_i32_32 dim 1 : vector<16x256xf32>, i32 -> vector<16x256xf32>
    %86 = vector.extract_strided_slice %2 {offsets = [3, 0], sizes = [1, 256], strides = [1, 1]} : vector<9x256xf32> to vector<1x256xf32>
    %87 = vector.broadcast %86 : vector<1x256xf32> to vector<16x256xf32>
    %88 = arith.mulf %85, %87 : vector<16x256xf32>
    %89 = arith.truncf %88 : vector<16x256xf32> to vector<16x256xbf16>
    %c48_33 = arith.constant 48 : index
    %c0_34 = arith.constant 0 : index
    %90 = vector.load %arg8[%c48_33, %c0_34] : memref<144x256xbf16, #tpu.memory_space<vmem>>, vector<16x256xbf16>
    tpu.vector_store %arg8[%c48_33, %c0_34], %89 {strides = array<i32>} : memref<144x256xbf16, #tpu.memory_space<vmem>>, vector<16x256xbf16>,
    %91 = arith.truncf %57 : vector<16x256xf32> to vector<16x256xbf16>
    %c64_35 = arith.constant 64 : index
    %c0_36 = arith.constant 0 : index
    %92 = vector.load %arg8[%c64_35, %c0_36] : memref<144x256xbf16, #tpu.memory_space<vmem>>, vector<16x256xbf16>
    tpu.vector_store %arg8[%c64_35, %c0_36], %91 {strides = array<i32>} : memref<144x256xbf16, #tpu.memory_space<vmem>>, vector<16x256xbf16>,
    %c255_i32_37 = arith.constant 255 : i32
    %93 = tpu.dynamic_rotate %57 by %c255_i32_37 dim 1 : vector<16x256xf32>, i32 -> vector<16x256xf32>
    %94 = vector.extract_strided_slice %2 {offsets = [5, 0], sizes = [1, 256], strides = [1, 1]} : vector<9x256xf32> to vector<1x256xf32>
    %95 = vector.broadcast %94 : vector<1x256xf32> to vector<16x256xf32>
    %96 = arith.mulf %93, %95 : vector<16x256xf32>
    %97 = arith.truncf %96 : vector<16x256xf32> to vector<16x256xbf16>
    %c80_38 = arith.constant 80 : index
    %c0_39 = arith.constant 0 : index
    %98 = vector.load %arg8[%c80_38, %c0_39] : memref<144x256xbf16, #tpu.memory_space<vmem>>, vector<16x256xbf16>
    tpu.vector_store %arg8[%c80_38, %c0_39], %97 {strides = array<i32>} : memref<144x256xbf16, #tpu.memory_space<vmem>>, vector<16x256xbf16>,
    %c241_i32_40 = arith.constant 241 : i32
    %99 = tpu.dynamic_rotate %57 by %c241_i32_40 dim 1 : vector<16x256xf32>, i32 -> vector<16x256xf32>
    %100 = vector.extract_strided_slice %2 {offsets = [6, 0], sizes = [1, 256], strides = [1, 1]} : vector<9x256xf32> to vector<1x256xf32>
    %101 = vector.broadcast %100 : vector<1x256xf32> to vector<16x256xf32>
    %102 = arith.mulf %99, %101 : vector<16x256xf32>
    %103 = arith.truncf %102 : vector<16x256xf32> to vector<16x256xbf16>
    %c96_41 = arith.constant 96 : index
    %c0_42 = arith.constant 0 : index
    %104 = vector.load %arg8[%c96_41, %c0_42] : memref<144x256xbf16, #tpu.memory_space<vmem>>, vector<16x256xbf16>
    tpu.vector_store %arg8[%c96_41, %c0_42], %103 {strides = array<i32>} : memref<144x256xbf16, #tpu.memory_space<vmem>>, vector<16x256xbf16>,
    %c240_i32_43 = arith.constant 240 : i32
    %105 = tpu.dynamic_rotate %57 by %c240_i32_43 dim 1 : vector<16x256xf32>, i32 -> vector<16x256xf32>
    %106 = vector.extract_strided_slice %2 {offsets = [7, 0], sizes = [1, 256], strides = [1, 1]} : vector<9x256xf32> to vector<1x256xf32>
    %107 = vector.broadcast %106 : vector<1x256xf32> to vector<16x256xf32>
    %108 = arith.mulf %105, %107 : vector<16x256xf32>
    %109 = arith.truncf %108 : vector<16x256xf32> to vector<16x256xbf16>
    %c112_44 = arith.constant 112 : index
    %c0_45 = arith.constant 0 : index
    %110 = vector.load %arg8[%c112_44, %c0_45] : memref<144x256xbf16, #tpu.memory_space<vmem>>, vector<16x256xbf16>
    tpu.vector_store %arg8[%c112_44, %c0_45], %109 {strides = array<i32>} : memref<144x256xbf16, #tpu.memory_space<vmem>>, vector<16x256xbf16>,
    %c239_i32_46 = arith.constant 239 : i32
    %111 = tpu.dynamic_rotate %57 by %c239_i32_46 dim 1 : vector<16x256xf32>, i32 -> vector<16x256xf32>
    %112 = vector.extract_strided_slice %2 {offsets = [8, 0], sizes = [1, 256], strides = [1, 1]} : vector<9x256xf32> to vector<1x256xf32>
    %113 = vector.broadcast %112 : vector<1x256xf32> to vector<16x256xf32>
    %114 = arith.mulf %111, %113 : vector<16x256xf32>
    %115 = arith.truncf %114 : vector<16x256xf32> to vector<16x256xbf16>
    %c128_47 = arith.constant 128 : index
    %c0_48 = arith.constant 0 : index
    %116 = vector.load %arg8[%c128_47, %c0_48] : memref<144x256xbf16, #tpu.memory_space<vmem>>, vector<16x256xbf16>
    tpu.vector_store %arg8[%c128_47, %c0_48], %115 {strides = array<i32>} : memref<144x256xbf16, #tpu.memory_space<vmem>>, vector<16x256xbf16>,
    %c0_49 = arith.constant 0 : index
    %c0_50 = arith.constant 0 : index
    %117 = vector.load %arg4[%c0_49, %c0_50] : memref<16x144xbf16, #tpu.memory_space<vmem>>, vector<16x144xbf16>
    %c0_51 = arith.constant 0 : index
    %c0_52 = arith.constant 0 : index
    %118 = vector.load %arg8[%c0_51, %c0_52] : memref<144x256xbf16, #tpu.memory_space<vmem>>, vector<144x256xbf16>
    %cst_53 = arith.constant dense<0.000000e+00> : vector<16x256xf32>
    %119 = tpu.matmul %117, %118, %cst_53 {dimension_numbers = #tpu.dot_dimension_numbers<[1], [0], [0], [1], [0, 0, 1, 1], [], []>} : vector<16x144xbf16>, vector<144x256xbf16>, vector<16x256xf32> -> vector<16x256xf32>
    %120 = arith.truncf %119 : vector<16x256xf32> to vector<16x256xbf16>
    %cst_54 = arith.constant dense<0.000000e+00> : vector<16x256xf32>
    %121 = tpu.matmul %3, %120, %cst_54 {dimension_numbers = #tpu.dot_dimension_numbers<[1], [0], [0], [1], [0, 0, 1, 1], [], []>} : vector<16x16xbf16>, vector<16x256xbf16>, vector<16x256xf32> -> vector<16x256xf32>
    %cst_55 = arith.constant 0.000000e+00 : f32
    %122 = vector.broadcast %cst_55 : f32 to vector<16x256xf32>
    %123 = arith.maximumf %121, %122 : vector<16x256xf32>
    %124 = arith.addf %66, %123 : vector<16x256xf32>
    %c17_i32_56 = arith.constant 17 : i32
    %125 = tpu.dynamic_rotate %119 by %c17_i32_56 dim 1 : vector<16x256xf32>, i32 -> vector<16x256xf32>
    %126 = vector.extract_strided_slice %2 {offsets = [0, 0], sizes = [1, 256], strides = [1, 1]} : vector<9x256xf32> to vector<1x256xf32>
    %127 = vector.broadcast %126 : vector<1x256xf32> to vector<16x256xf32>
    %128 = arith.mulf %125, %127 : vector<16x256xf32>
    %129 = arith.truncf %128 : vector<16x256xf32> to vector<16x256xbf16>
    %c0_57 = arith.constant 0 : index
    %c0_58 = arith.constant 0 : index
    %130 = vector.load %arg8[%c0_57, %c0_58] : memref<144x256xbf16, #tpu.memory_space<vmem>>, vector<16x256xbf16>
    tpu.vector_store %arg8[%c0_57, %c0_58], %129 {strides = array<i32>} : memref<144x256xbf16, #tpu.memory_space<vmem>>, vector<16x256xbf16>,
    %c16_i32_59 = arith.constant 16 : i32
    %131 = tpu.dynamic_rotate %119 by %c16_i32_59 dim 1 : vector<16x256xf32>, i32 -> vector<16x256xf32>
    %132 = vector.extract_strided_slice %2 {offsets = [1, 0], sizes = [1, 256], strides = [1, 1]} : vector<9x256xf32> to vector<1x256xf32>
    %133 = vector.broadcast %132 : vector<1x256xf32> to vector<16x256xf32>
    %134 = arith.mulf %131, %133 : vector<16x256xf32>
    %135 = arith.truncf %134 : vector<16x256xf32> to vector<16x256xbf16>
    %c16_60 = arith.constant 16 : index
    %c0_61 = arith.constant 0 : index
    %136 = vector.load %arg8[%c16_60, %c0_61] : memref<144x256xbf16, #tpu.memory_space<vmem>>, vector<16x256xbf16>
    tpu.vector_store %arg8[%c16_60, %c0_61], %135 {strides = array<i32>} : memref<144x256xbf16, #tpu.memory_space<vmem>>, vector<16x256xbf16>,
    %c15_i32_62 = arith.constant 15 : i32
    %137 = tpu.dynamic_rotate %119 by %c15_i32_62 dim 1 : vector<16x256xf32>, i32 -> vector<16x256xf32>
    %138 = vector.extract_strided_slice %2 {offsets = [2, 0], sizes = [1, 256], strides = [1, 1]} : vector<9x256xf32> to vector<1x256xf32>
    %139 = vector.broadcast %138 : vector<1x256xf32> to vector<16x256xf32>
    %140 = arith.mulf %137, %139 : vector<16x256xf32>
    %141 = arith.truncf %140 : vector<16x256xf32> to vector<16x256xbf16>
    %c32_63 = arith.constant 32 : index
    %c0_64 = arith.constant 0 : index
    %142 = vector.load %arg8[%c32_63, %c0_64] : memref<144x256xbf16, #tpu.memory_space<vmem>>, vector<16x256xbf16>
    tpu.vector_store %arg8[%c32_63, %c0_64], %141 {strides = array<i32>} : memref<144x256xbf16, #tpu.memory_space<vmem>>, vector<16x256xbf16>,
    %c1_i32_65 = arith.constant 1 : i32
    %143 = tpu.dynamic_rotate %119 by %c1_i32_65 dim 1 : vector<16x256xf32>, i32 -> vector<16x256xf32>
    %144 = vector.extract_strided_slice %2 {offsets = [3, 0], sizes = [1, 256], strides = [1, 1]} : vector<9x256xf32> to vector<1x256xf32>
    %145 = vector.broadcast %144 : vector<1x256xf32> to vector<16x256xf32>
    %146 = arith.mulf %143, %145 : vector<16x256xf32>
    %147 = arith.truncf %146 : vector<16x256xf32> to vector<16x256xbf16>
    %c48_66 = arith.constant 48 : index
    %c0_67 = arith.constant 0 : index
    %148 = vector.load %arg8[%c48_66, %c0_67] : memref<144x256xbf16, #tpu.memory_space<vmem>>, vector<16x256xbf16>
    tpu.vector_store %arg8[%c48_66, %c0_67], %147 {strides = array<i32>} : memref<144x256xbf16, #tpu.memory_space<vmem>>, vector<16x256xbf16>,
    %149 = arith.truncf %119 : vector<16x256xf32> to vector<16x256xbf16>
    %c64_68 = arith.constant 64 : index
    %c0_69 = arith.constant 0 : index
    %150 = vector.load %arg8[%c64_68, %c0_69] : memref<144x256xbf16, #tpu.memory_space<vmem>>, vector<16x256xbf16>
    tpu.vector_store %arg8[%c64_68, %c0_69], %149 {strides = array<i32>} : memref<144x256xbf16, #tpu.memory_space<vmem>>, vector<16x256xbf16>,
    %c255_i32_70 = arith.constant 255 : i32
    %151 = tpu.dynamic_rotate %119 by %c255_i32_70 dim 1 : vector<16x256xf32>, i32 -> vector<16x256xf32>
    %152 = vector.extract_strided_slice %2 {offsets = [5, 0], sizes = [1, 256], strides = [1, 1]} : vector<9x256xf32> to vector<1x256xf32>
    %153 = vector.broadcast %152 : vector<1x256xf32> to vector<16x256xf32>
    %154 = arith.mulf %151, %153 : vector<16x256xf32>
    %155 = arith.truncf %154 : vector<16x256xf32> to vector<16x256xbf16>
    %c80_71 = arith.constant 80 : index
    %c0_72 = arith.constant 0 : index
    %156 = vector.load %arg8[%c80_71, %c0_72] : memref<144x256xbf16, #tpu.memory_space<vmem>>, vector<16x256xbf16>
    tpu.vector_store %arg8[%c80_71, %c0_72], %155 {strides = array<i32>} : memref<144x256xbf16, #tpu.memory_space<vmem>>, vector<16x256xbf16>,
    %c241_i32_73 = arith.constant 241 : i32
    %157 = tpu.dynamic_rotate %119 by %c241_i32_73 dim 1 : vector<16x256xf32>, i32 -> vector<16x256xf32>
    %158 = vector.extract_strided_slice %2 {offsets = [6, 0], sizes = [1, 256], strides = [1, 1]} : vector<9x256xf32> to vector<1x256xf32>
    %159 = vector.broadcast %158 : vector<1x256xf32> to vector<16x256xf32>
    %160 = arith.mulf %157, %159 : vector<16x256xf32>
    %161 = arith.truncf %160 : vector<16x256xf32> to vector<16x256xbf16>
    %c96_74 = arith.constant 96 : index
    %c0_75 = arith.constant 0 : index
    %162 = vector.load %arg8[%c96_74, %c0_75] : memref<144x256xbf16, #tpu.memory_space<vmem>>, vector<16x256xbf16>
    tpu.vector_store %arg8[%c96_74, %c0_75], %161 {strides = array<i32>} : memref<144x256xbf16, #tpu.memory_space<vmem>>, vector<16x256xbf16>,
    %c240_i32_76 = arith.constant 240 : i32
    %163 = tpu.dynamic_rotate %119 by %c240_i32_76 dim 1 : vector<16x256xf32>, i32 -> vector<16x256xf32>
    %164 = vector.extract_strided_slice %2 {offsets = [7, 0], sizes = [1, 256], strides = [1, 1]} : vector<9x256xf32> to vector<1x256xf32>
    %165 = vector.broadcast %164 : vector<1x256xf32> to vector<16x256xf32>
    %166 = arith.mulf %163, %165 : vector<16x256xf32>
    %167 = arith.truncf %166 : vector<16x256xf32> to vector<16x256xbf16>
    %c112_77 = arith.constant 112 : index
    %c0_78 = arith.constant 0 : index
    %168 = vector.load %arg8[%c112_77, %c0_78] : memref<144x256xbf16, #tpu.memory_space<vmem>>, vector<16x256xbf16>
    tpu.vector_store %arg8[%c112_77, %c0_78], %167 {strides = array<i32>} : memref<144x256xbf16, #tpu.memory_space<vmem>>, vector<16x256xbf16>,
    %c239_i32_79 = arith.constant 239 : i32
    %169 = tpu.dynamic_rotate %119 by %c239_i32_79 dim 1 : vector<16x256xf32>, i32 -> vector<16x256xf32>
    %170 = vector.extract_strided_slice %2 {offsets = [8, 0], sizes = [1, 256], strides = [1, 1]} : vector<9x256xf32> to vector<1x256xf32>
    %171 = vector.broadcast %170 : vector<1x256xf32> to vector<16x256xf32>
    %172 = arith.mulf %169, %171 : vector<16x256xf32>
    %173 = arith.truncf %172 : vector<16x256xf32> to vector<16x256xbf16>
    %c128_80 = arith.constant 128 : index
    %c0_81 = arith.constant 0 : index
    %174 = vector.load %arg8[%c128_80, %c0_81] : memref<144x256xbf16, #tpu.memory_space<vmem>>, vector<16x256xbf16>
    tpu.vector_store %arg8[%c128_80, %c0_81], %173 {strides = array<i32>} : memref<144x256xbf16, #tpu.memory_space<vmem>>, vector<16x256xbf16>,
    %c0_82 = arith.constant 0 : index
    %c0_83 = arith.constant 0 : index
    %175 = vector.load %arg5[%c0_82, %c0_83] : memref<16x144xbf16, #tpu.memory_space<vmem>>, vector<16x144xbf16>
    %c0_84 = arith.constant 0 : index
    %c0_85 = arith.constant 0 : index
    %176 = vector.load %arg8[%c0_84, %c0_85] : memref<144x256xbf16, #tpu.memory_space<vmem>>, vector<144x256xbf16>
    %cst_86 = arith.constant dense<0.000000e+00> : vector<16x256xf32>
    %177 = tpu.matmul %175, %176, %cst_86 {dimension_numbers = #tpu.dot_dimension_numbers<[1], [0], [0], [1], [0, 0, 1, 1], [], []>} : vector<16x144xbf16>, vector<144x256xbf16>, vector<16x256xf32> -> vector<16x256xf32>
    %178 = arith.truncf %177 : vector<16x256xf32> to vector<16x256xbf16>
    %cst_87 = arith.constant dense<0.000000e+00> : vector<16x256xf32>
    %179 = tpu.matmul %3, %178, %cst_87 {dimension_numbers = #tpu.dot_dimension_numbers<[1], [0], [0], [1], [0, 0, 1, 1], [], []>} : vector<16x16xbf16>, vector<16x256xbf16>, vector<16x256xf32> -> vector<16x256xf32>
    %cst_88 = arith.constant 0.000000e+00 : f32
    %180 = vector.broadcast %cst_88 : f32 to vector<16x256xf32>
    %181 = arith.maximumf %179, %180 : vector<16x256xf32>
    %182 = arith.addf %124, %181 : vector<16x256xf32>
    %183 = vector.extract_strided_slice %182 {offsets = [0, 0], sizes = [4, 256], strides = [1, 1]} : vector<16x256xf32> to vector<4x256xf32>
    %c0_89 = arith.constant 0 : index
    %c0_90 = arith.constant 0 : index
    %c0_91 = arith.constant 0 : index
    %184 = vector.load %arg7[%c0_89, %c0_90, %c0_91] : memref<1x4x256xf32, #tpu.memory_space<vmem>>, vector<1x4x256xf32>
    %185 = vector.shape_cast %184 : vector<1x4x256xf32> to vector<4x256xf32>
    %186 = vector.shape_cast %183 : vector<4x256xf32> to vector<1x4x256xf32>
    tpu.vector_store %arg7[%c0_89, %c0_90, %c0_91], %186 {strides = array<i32>} : memref<1x4x256xf32, #tpu.memory_space<vmem>>, vector<1x4x256xf32>,
    return
  }
  func.func @transform_0(%arg0: i32) -> (i32, i32, i32) {
    %c0_i32 = arith.constant 0 : i32
    %c0_i32_0 = arith.constant 0 : i32
    %c0_i32_1 = arith.constant 0 : i32
    return %arg0, %c0_i32, %c0_i32_0 : i32, i32, i32
  }
  func.func @transform_1(%arg0: i32) -> (i32, i32) {
    %c0_i32 = arith.constant 0 : i32
    %c0_i32_0 = arith.constant 0 : i32
    %c0_i32_1 = arith.constant 0 : i32
    return %c0_i32, %c0_i32_0 : i32, i32
  }
  func.func @transform_2(%arg0: i32) -> (i32, i32) {
    %c0_i32 = arith.constant 0 : i32
    %c0_i32_0 = arith.constant 0 : i32
    %c0_i32_1 = arith.constant 0 : i32
    return %c0_i32, %c0_i32_0 : i32, i32
  }
  func.func @transform_3(%arg0: i32) -> (i32, i32) {
    %c0_i32 = arith.constant 0 : i32
    %c0_i32_0 = arith.constant 0 : i32
    %c0_i32_1 = arith.constant 0 : i32
    return %c0_i32, %c0_i32_0 : i32, i32
  }
  func.func @transform_4(%arg0: i32) -> (i32, i32) {
    %c0_i32 = arith.constant 0 : i32
    %c0_i32_0 = arith.constant 0 : i32
    %c0_i32_1 = arith.constant 0 : i32
    return %c0_i32, %c0_i32_0 : i32, i32
  }
  func.func @transform_5(%arg0: i32) -> (i32, i32) {
    %c0_i32 = arith.constant 0 : i32
    %c0_i32_0 = arith.constant 0 : i32
    %c0_i32_1 = arith.constant 0 : i32
    return %c0_i32, %c0_i32_0 : i32, i32
  }
  func.func @transform_6(%arg0: i32) -> (i32, i32, i32) {
    %c0_i32 = arith.constant 0 : i32
    %c0_i32_0 = arith.constant 0 : i32
    %c0_i32_1 = arith.constant 0 : i32
    return %arg0, %c0_i32, %c0_i32_0 : i32, i32, i32
  }
}

</mosaic_0001>

<bundles_post_ra>
// kernel: dac_block_forward.1
= control target key start
LH: loop header
LB: loop body
LE: loop exit
PB: predicated region body
PF: predicated region fallthrough
CT: control target
= control target key end

     0   :  { %s1943_s21 = smov 0   ;;  %s2614_s0 = inlined_call_operand.vmem [shape: f32[2,16,256], index: 0, kind: input, shape index: {}]   ;;  %s2615_s1 = inlined_call_operand.vmem [shape: f32[9,256], index: 1, kind: input, shape index: {}]   ;;  %s2616_s2 = inlined_call_operand.vmem [shape: bf16[32,144], index: 2, kind: input, shape index: {}]   ;;  %s2617_s3 = inlined_call_operand.vmem [shape: bf16[16,144], index: 3, kind: input, shape index: {}]   ;;  %s2618_s4 = inlined_call_operand.vmem [shape: bf16[16,144], index: 4, kind: input, shape index: {}]   ;;  %s2619_s5 = inlined_call_operand.vmem [shape: bf16[16,16], index: 5, kind: input, shape index: {}]   ;;  %s2620_s6 = inlined_call_operand.vmem [shape: f32[2,4,256], index: 6, kind: output, shape index: {}]  }
   0x1 LB: > { %s1528_s22 = sadd.s32 4294967295, %s1898_s21   ;;  %p1532_p0 = scmp.ge.s32.totalorder %s1898_s21, 1  ;;  %s1898_s21 = sphi %s1943_s21, %s16_s21  }
   0x2   : > { %p212_p1 = scmp.lt.s32.totalorder %s1898_s21, 3 }
   0x4   : > { %p213_p2 = pnand %p1532_p0, %p212_p1 }
   0x5   : > { %p242_p3 = scmp.lt.s32.totalorder (!%p213_p2), %s1528_s22, 1  ;;  %s1900_s27 = smov (!%p213_p2), 112  }
   0x6   : > { %216 = sbr.rel (%p213_p2) target bundleno = 1193 (0x4a9), region = 44  ;;  %s1901_s28 = smov (!%p213_p2), 113  }
   0x7   : > { %s1902_s29 = smov (!%p213_p2), 127   ;;  %s1903_s30 = smov (!%p213_p2), 1  }
   0x8   : > { %s1904_s7 = smov (!%p213_p2), 15   ;;  %s1905_s8 = smov (!%p213_p2), 16  }
   0x9   : > { %s1906_s9 = smov (!%p213_p2), 17   ;;  %s1907_s10 = smov (!%p213_p2), 111  }
   0xb   : > { %s2622_s22 = smov (!%p242_p3, %s1528_s22), 1  ;;  %v271_v5 = vlaneseq  ;;  %v2040_v8 = vld [vmem:[%s2615_s1] sm:$0xff]  ;;  %v2045_v9 = vld [vmem:[%s2615_s1 + $0x8] sm:$0xff]  ;;  %vm583_vm8 = vcmask 130048   ;;  %vm1469_vm9 = vcmask 1043456  }
   0xc   : > { %s1805_s23 = sshll.u32 %s2622_s22, 5  ;;  %v2049_v10 = vperm.slane %v2040_v8, 7  ;;  %v2052_v11 = vperm.slane %v2045_v9, 7  ;;  %v2072_v30 = vperm.slane %v2040_v8, 6  ;;  %v2075_v31 = vperm.slane %v2045_v9, 6  ;;  %s1806_s11 = sshll.u32 %s2622_s22, 3 }
   0xd   : > { %s1957_s26 = scalar_lea.vmem %s2614_s0, %s1805_s23  ;;  %v2035_v7 = vand.u32 127, %v271_v5  ;;  %v2091_v49 = vperm.slane %v2040_v8, 5  ;;  %v2094_v50 = vperm.slane %v2045_v9, 5  ;;  %s251_s14 = scalar_lea.vmem %s2620_s6, %s1806_s11 }
   0xe   : > { %v1960_v0 = vld [vmem:[%s1957_s26 + $0x8] sm:$0xff]  ;;  %v1963_v1 = vld [vmem:[%s1957_s26] sm:$0xff]  ;;  %v1972_v2 = vld [vmem:[%s1957_s26 + $0x18] sm:$0xff] }
   0xf   : > { %411 = vrot.lane.b32.xlu1 %v1960_v0, %s1900_s27  ;;  %407 = vrot.lane.b32.xlu0 %v1963_v1, %s1900_s27  ;;  %v1975_v3 = vld [vmem:[%s1957_s26 + $0x10] sm:$0xff]  ;;  %vm415_vm0 = vcmp.lt.s32.totalorder %v2035_v7, 112  ;;  %v357_v24 = vpack.c.bf16 %v1960_v0, %v1963_v1  ;;  %vm392_vm1 = vcmp.lt.s32.totalorder %v2035_v7, 113  ;;  %vm369_vm2 = vcmp.lt.s32.totalorder %v2035_v7, 127 }
  0x10   : > { %384 = vrot.lane.b32.xlu2 %v1963_v1, %s1901_s28  ;;  %v358_v25 = vpack.c.bf16 %v1972_v2, %v1975_v3  ;;  %vm342_vm3 = vcmp.lt.s32.totalorder %v2035_v7, 1  ;;  %vm319_vm4 = vcmp.lt.s32.totalorder %v2035_v7, 15  ;;  %vm296_vm5 = vcmp.lt.s32.totalorder %v2035_v7, 16 }
  0x11   : > { %359 = vst [vmem:[#allocation2 + $0x40] sm:$0xff] %v357_v24  ;;  %vm273_vm6 = vcmp.lt.s32.totalorder %v2035_v7, 17  ;;  %vm438_vm7 = vcmp.lt.s32.totalorder %v2035_v7, 111 }
  0x12   : > { %360 = vst [vmem:[#allocation2 + $0x48] sm:$0xff] %v358_v25 }
  0x17   : > { %413 = vrot.lane.b32.xlu1 %v1972_v2, %s1900_s27  ;;  %409 = vrot.lane.b32.xlu0 %v1975_v3, %s1900_s27 }
  0x18   : > { %386 = vrot.lane.b32.xlu2 %v1975_v3, %s1901_s28  ;;  %v1820_v25 = vld [vmem:[#allocation2 + $0x44] sm:$0xf] }
  0x19   : > { %v1821_v24 = vld [vmem:[#allocation2 + $0x44] sm:$0xf0] }
  0x1f   : > { %390 = vrot.lane.b32.xlu1 %v1972_v2, %s1901_s28  ;;  %388 = vrot.lane.b32.xlu0 %v1960_v0, %s1901_s28 }
  0x20   : > { %361 = vrot.lane.b32.xlu2 %v1963_v1, %s1902_s29 }
  0x27   : > { %365 = vrot.lane.b32.xlu1 %v1960_v0, %s1902_s29  ;;  %363 = vrot.lane.b32.xlu0 %v1975_v3, %s1902_s29 }
  0x28   : > { %367 = vrot.lane.b32.xlu2 %v1972_v2, %s1902_s29 }
  0x2f   : > { %336 = vrot.lane.b32.xlu1 %v1975_v3, %s1903_s30  ;;  %334 = vrot.lane.b32.xlu0 %v1963_v1, %s1903_s30 }
  0x30   : > { %338 = vrot.lane.b32.xlu2 %v1960_v0, %s1903_s30 }
  0x37   : > { %311 = vrot.lane.b32.xlu1 %v1963_v1, %s1904_s7  ;;  %340 = vrot.lane.b32.xlu0 %v1972_v2, %s1903_s30 }
  0x38   : > { %313 = vrot.lane.b32.xlu2 %v1975_v3, %s1904_s7 }
  0x3f   : > { %317 = vrot.lane.b32.xlu1 %v1972_v2, %s1904_s7  ;;  %315 = vrot.lane.b32.xlu0 %v1960_v0, %s1904_s7 }
  0x40   : > { %288 = vrot.lane.b32.xlu2 %v1963_v1, %s1905_s8 }
  0x47   : > { %292 = vrot.lane.b32.xlu1 %v1960_v0, %s1905_s8  ;;  %290 = vrot.lane.b32.xlu0 %v1975_v3, %s1905_s8 }
  0x48   : > { %294 = vrot.lane.b32.xlu2 %v1972_v2, %s1905_s8 }
  0x4f   : > { %265 = vrot.lane.b32.xlu1 %v1975_v3, %s1906_s9  ;;  %263 = vrot.lane.b32.xlu0 %v1963_v1, %s1906_s9 }
  0x50   : > { %267 = vrot.lane.b32.xlu2 %v1960_v0, %s1906_s9 }
  0x57   : > { %430 = vrot.lane.b32.xlu1 %v1963_v1, %s1907_s10  ;;  %269 = vrot.lane.b32.xlu0 %v1972_v2, %s1906_s9 }
  0x58   : > { %432 = vrot.lane.b32.xlu2 %v1975_v3, %s1907_s10 }
  0x5f   : > { %436 = vrot.lane.b32.xlu1 %v1972_v2, %s1907_s10  ;;  %434 = vrot.lane.b32.xlu0 %v1960_v0, %s1907_s10 }
  0x6a   : > { %v385_v4 = vpop.permute.xlu2 %384 }
  0x72   : > { %v387_v6 = vpop.permute.xlu2 %386 }
  0x7a   : > { %v362_v16 = vpop.permute.xlu2 %361 }
  0x81   : > { %v412_v12 = vpop.permute.xlu1 %411  ;;  %v408_v13 = vpop.permute.xlu0 %407 }
  0x82   : > { %v416_v14 = vsel %vm415_vm0, %v408_v13, %v412_v12  ;;  %v418_v15 = vsel %vm415_vm0, %v412_v12, %v408_v13  ;;  %v368_v28 = vpop.permute.xlu2 %367  ;;  %v2113_v12 = vperm.slane %v2045_v9, 3 }
  0x83   : > { %v422_v17 = vmul.f32 %v2049_v10, %v416_v14  ;;  %v423_v18 = vmul.f32 %v2052_v11, %v418_v15 }
  0x85   : > { %v426_v19 = vpack.c.bf16 %v423_v18, %v422_v17 }
  0x87   : > { %428 = vst [vmem:[#allocation2 + $0x70] sm:$0xff] %v426_v19 }
  0x89   : > { %v414_v20 = vpop.permute.xlu1 %413  ;;  %v410_v21 = vpop.permute.xlu0 %409 }
  0x8a   : > { %v417_v22 = vsel %vm415_vm0, %v410_v21, %v414_v20  ;;  %v419_v23 = vsel %vm415_vm0, %v414_v20, %v410_v21  ;;  %v339_v48 = vpop.permute.xlu2 %338 }
  0x8b   : > { %v424_v26 = vmul.f32 %v2049_v10, %v417_v22  ;;  %v425_v27 = vmul.f32 %v2052_v11, %v419_v23  ;;  %v1587_v23 = vld [vmem:[#allocation2 + $0x40] sm:$0xf] }
  0x8d   : > { %v427_v29 = vpack.c.bf16 %v425_v27, %v424_v26 }
  0x8e   : > { %v1611_v44 = vld [vmem:[#allocation2 + $0x70] sm:$0xf]  ;;  %v1826_v46 = vld [vmem:[#allocation2 + $0x74] sm:$0xf] }
  0x8f   : > { %429 = vst [vmem:[#allocation2 + $0x78] sm:$0xff] %v427_v29 }
  0x91   : > { %v391_v32 = vpop.permute.xlu1 %390  ;;  %v389_v33 = vpop.permute.xlu0 %388 }
  0x92   : > { %v394_v34 = vsel %vm392_vm1, %v387_v6, %v391_v32  ;;  %v396_v35 = vsel %vm392_vm1, %v391_v32, %v387_v6  ;;  %v393_v36 = vsel %vm392_vm1, %v385_v4, %v389_v33  ;;  %v395_v37 = vsel %vm392_vm1, %v389_v33, %v385_v4  ;;  %v314_v15 = vpop.permute.xlu2 %313 }
  0x93   : > { %v401_v38 = vmul.f32 %v2072_v30, %v394_v34  ;;  %v402_v39 = vmul.f32 %v2075_v31, %v396_v35  ;;  %v399_v40 = vmul.f32 %v2072_v30, %v393_v36  ;;  %v400_v41 = vmul.f32 %v2075_v31, %v395_v37 }
  0x94   : > { %v2110_v4 = vperm.slane %v2040_v8, 3  ;;  %v1588_v37 = vor.u32 %v1821_v24, %v1587_v23 }
  0x95   : > { %v404_v42 = vpack.c.bf16 %v402_v39, %v401_v38  ;;  %v403_v43 = vpack.c.bf16 %v400_v41, %v399_v40 }
  0x96   : > { %v1827_v45 = vld [vmem:[#allocation2 + $0x74] sm:$0xf0]  ;;  %v1613_v47 = vld [vmem:[#allocation2 + $0x78] sm:$0xf0] }
  0x97   : > { %406 = vst [vmem:[#allocation2 + $0x68] sm:$0xff] %v404_v42  ;;  %v1612_v51 = vor.u32 %v1827_v45, %v1611_v44  ;;  %v1616_v52 = vor.u32 %v1826_v46, %v1613_v47  ;;  %v2129_v45 = vperm.slane %v2040_v8, 2  ;;  %v2132_v46 = vperm.slane %v2045_v9, 2 }
  0x98   : > { %405 = vst [vmem:[#allocation2 + $0x60] sm:$0xff] %v403_v43 }
  0x99   : > { %v366_v53 = vpop.permute.xlu1 %365  ;;  %590 = vmatpush.bf16.msra.mxu0 %v1612_v51  ;;  %628 = vmatpush.bf16.msra.mxu2 %v1616_v52  ;;  %v364_v54 = vpop.permute.xlu0 %363 }
  0x9a   : > { %v370_v55 = vsel %vm369_vm2, %v362_v16, %v366_v53  ;;  %v372_v56 = vsel %vm369_vm2, %v366_v53, %v362_v16  ;;  %v371_v57 = vsel %vm369_vm2, %v364_v54, %v368_v28  ;;  %v373_v58 = vsel %vm369_vm2, %v368_v28, %v364_v54  ;;  %v1589_v28 = vld [vmem:[#allocation2 + $0x48] sm:$0xf0]  ;;  %v289_v43 = vpop.permute.xlu2 %288 }
  0x9b   : > { %v376_v59 = vmul.f32 %v2091_v49, %v370_v55  ;;  %v377_v60 = vmul.f32 %v2094_v50, %v372_v56  ;;  %v378_v61 = vmul.f32 %v2091_v49, %v371_v57  ;;  %v379_v62 = vmul.f32 %v2094_v50, %v373_v58 }
  0x9c   : > { %v1592_v40 = vor.u32 %v1820_v25, %v1589_v28 }
  0x9d   : > { %v380_v63 = vpack.c.bf16 %v377_v60, %v376_v59  ;;  %v381_v0 = vpack.c.bf16 %v379_v62, %v378_v61 }
  0x9e   : > { %v1825_v2 = vld [vmem:[#allocation2 + $0x64] sm:$0xf0]  ;;  %v1605_v3 = vld [vmem:[#allocation2 + $0x68] sm:$0xf0] }
  0x9f   : > { %382 = vst [vmem:[#allocation2 + $0x50] sm:$0xff] %v380_v63  ;;  %v1603_v5 = vld [vmem:[#allocation2 + $0x60] sm:$0xf]  ;;  %v1824_v6 = vld [vmem:[#allocation2 + $0x64] sm:$0xf] }
  0xa0   : > { %383 = vst [vmem:[#allocation2 + $0x58] sm:$0xff] %v381_v0  ;;  %v1604_v13 = vor.u32 %v1825_v2, %v1603_v5  ;;  %v1608_v14 = vor.u32 %v1824_v6, %v1605_v3  ;;  %v2148_v3 = vperm.slane %v2040_v8, 1  ;;  %v2151_v5 = vperm.slane %v2045_v9, 1 }
  0xa1   : > { %v337_v16 = vpop.permute.xlu1 %336  ;;  %v335_v17 = vpop.permute.xlu0 %334 }
  0xa2   : > { %591 = vmatpush.bf16.msra.mxu0 %v1604_v13  ;;  %629 = vmatpush.bf16.msra.mxu2 %v1608_v14  ;;  %v343_v18 = vsel %vm342_vm3, %v335_v17, %v339_v48  ;;  %v345_v19 = vsel %vm342_vm3, %v339_v48, %v335_v17  ;;  %v295_v61 = vpop.permute.xlu2 %294 }
  0xa3   : > { %v349_v20 = vmul.f32 %v2110_v4, %v345_v19  ;;  %v350_v21 = vmul.f32 %v2113_v12, %v343_v18 }
  0xa5   : > { %v353_v22 = vpack.c.bf16 %v350_v21, %v349_v20 }
  0xa6   : > { %v1595_v26 = vld [vmem:[#allocation2 + $0x50] sm:$0xf]  ;;  %v1822_v27 = vld [vmem:[#allocation2 + $0x54] sm:$0xf] }
  0xa7   : > { %355 = vst [vmem:[#allocation2 + $0x30] sm:$0xff] %v353_v22  ;;  %v1823_v29 = vld [vmem:[#allocation2 + $0x54] sm:$0xf0]  ;;  %v1597_v32 = vld [vmem:[#allocation2 + $0x58] sm:$0xf0] }
  0xa8   : > { %v1596_v33 = vor.u32 %v1823_v29, %v1595_v26  ;;  %v1600_v34 = vor.u32 %v1822_v27, %v1597_v32  ;;  %v2167_v26 = vperm.slane %v2040_v8, 0  ;;  %v2170_v32 = vperm.slane %v2045_v9, 0 }
  0xa9   : > { %v312_v35 = vpop.permute.xlu1 %311  ;;  %v341_v36 = vpop.permute.xlu0 %340 }
  0xaa   : > { %592 = vmatpush.bf16.msra.mxu0 %v1596_v33  ;;  %630 = vmatpush.bf16.msra.mxu2 %v1600_v34  ;;  %v344_v38 = vsel %vm342_vm3, %v337_v16, %v341_v36  ;;  %v346_v39 = vsel %vm342_vm3, %v341_v36, %v337_v16  ;;  %v268_v29 = vpop.permute.xlu2 %267 }
  0xab   : > { %v351_v41 = vmul.f32 %v2110_v4, %v346_v39  ;;  %v352_v42 = vmul.f32 %v2113_v12, %v344_v38 }
  0xad   : > { %v354_v44 = vpack.c.bf16 %v352_v42, %v351_v41 }
  0xae   : > { %593 = vmatpush.bf16.msra.mxu0 %v1588_v37  ;;  %631 = vmatpush.bf16.msra.mxu2 %v1592_v40  ;;  %v1579_v62 = vld [vmem:[#allocation2 + $0x30] sm:$0xf]  ;;  %v1818_v0 = vld [vmem:[#allocation2 + $0x34] sm:$0xf] }
  0xaf   : > { %356 = vst [vmem:[#allocation2 + $0x38] sm:$0xff] %v354_v44 }
  0xb1   : > { %v318_v47 = vpop.permute.xlu1 %317  ;;  %v316_v48 = vpop.permute.xlu0 %315 }
  0xb2   : > { %v321_v51 = vsel %vm319_vm4, %v314_v15, %v318_v47  ;;  %v323_v52 = vsel %vm319_vm4, %v318_v47, %v314_v15  ;;  %v320_v53 = vsel %vm319_vm4, %v312_v35, %v316_v48  ;;  %v322_v54 = vsel %vm319_vm4, %v316_v48, %v312_v35 }
  0xb3   : > { %v328_v55 = vmul.f32 %v2129_v45, %v323_v52  ;;  %v329_v56 = vmul.f32 %v2132_v46, %v321_v51  ;;  %v326_v57 = vmul.f32 %v2129_v45, %v322_v54  ;;  %v327_v58 = vmul.f32 %v2132_v46, %v320_v53 }
  0xb5   : > { %v331_v59 = vpack.c.bf16 %v329_v56, %v328_v55  ;;  %v330_v60 = vpack.c.bf16 %v327_v58, %v326_v57 }
  0xb6   : > { %v1819_v63 = vld [vmem:[#allocation2 + $0x34] sm:$0xf0]  ;;  %v1581_v2 = vld [vmem:[#allocation2 + $0x38] sm:$0xf0] }
  0xb7   : > { %333 = vst [vmem:[#allocation2 + $0x28] sm:$0xff] %v331_v59  ;;  %v1580_v6 = vor.u32 %v1819_v63, %v1579_v62  ;;  %v1584_v13 = vor.u32 %v1818_v0, %v1581_v2  ;;  %v2188_v59 = vld [vmem:[%s2615_s1 + $0x10] ss:$0 sm:$0xff] }
  0xb8   : > { %332 = vst [vmem:[#allocation2 + $0x20] sm:$0xff] %v330_v60  ;;  %v2193_v60 = vld [vmem:[%s2615_s1 + $0x18] ss:$0 sm:$0xff] }
  0xb9   : > { %v293_v14 = vpop.permute.xlu1 %292  ;;  %v291_v15 = vpop.permute.xlu0 %290  ;;  %594 = vmatpush.bf16.msra.mxu0 %v1580_v6  ;;  %632 = vmatpush.bf16.msra.mxu2 %v1584_v13 }
  0xba   : > { %v297_v16 = vsel %vm296_vm5, %v289_v43, %v293_v14  ;;  %v299_v17 = vsel %vm296_vm5, %v293_v14, %v289_v43  ;;  %v298_v18 = vsel %vm296_vm5, %v291_v15, %v295_v61  ;;  %v300_v19 = vsel %vm296_vm5, %v295_v61, %v291_v15  ;;  %v433_v61 = vpop.permute.xlu2 %432 }
  0xbb   : > { %v303_v20 = vmul.f32 %v2148_v3, %v299_v17  ;;  %v304_v21 = vmul.f32 %v2151_v5, %v297_v16  ;;  %v305_v22 = vmul.f32 %v2148_v3, %v300_v19  ;;  %v306_v23 = vmul.f32 %v2151_v5, %v298_v18 }
  0xbd   : > { %v307_v24 = vpack.c.bf16 %v304_v21, %v303_v20  ;;  %v308_v25 = vpack.c.bf16 %v306_v23, %v305_v22  ;;  %v1539_v21 = vld [vmem:[%s2616_s2] sm:$0xf]  ;;  %v1809_v22 = vld [vmem:[%s2616_s2 + $0x4] sm:$0xf0] }
  0xbe   : > { %v1817_v27 = vld [vmem:[#allocation2 + $0x24] sm:$0xf0]  ;;  %v1573_v28 = vld [vmem:[#allocation2 + $0x28] sm:$0xf0] }
  0xbf   : > { %309 = vst [vmem:[#allocation2 + $0x10] sm:$0xff] %v307_v24  ;;  %v1571_v33 = vld [vmem:[#allocation2 + $0x20] sm:$0xf]  ;;  %v1816_v34 = vld [vmem:[#allocation2 + $0x24] sm:$0xf] }
  0xc0   : > { %310 = vst [vmem:[#allocation2 + $0x18] sm:$0xff] %v308_v25  ;;  %v1572_v35 = vor.u32 %v1817_v27, %v1571_v33  ;;  %v1576_v36 = vor.u32 %v1816_v34, %v1573_v28  ;;  %v1808_v33 = vld [vmem:[%s2616_s2 + $0x4] sm:$0xf] }
  0xc1   : > { %v266_v37 = vpop.permute.xlu1 %265  ;;  %v264_v38 = vpop.permute.xlu0 %263 }
  0xc2   : > { %v274_v39 = vsel %vm273_vm6, %v264_v38, %v268_v29  ;;  %v276_v8 = vsel %vm273_vm6, %v268_v29, %v264_v38  ;;  %595 = vmatpush.bf16.msra.mxu0 %v1572_v35  ;;  %633 = vmatpush.bf16.msra.mxu2 %v1576_v36  ;;  %v1540_v29 = vor.u32 %v1809_v22, %v1539_v21  ;;  %v1541_v36 = vld [vmem:[%s2616_s2 + $0x8] sm:$0xf0]  ;;  %v2268_v22 = vld [vmem:[%s2619_s5] sm:$0xff] }
  0xc3   : > { %v280_v40 = vmul.f32 %v2167_v26, %v276_v8  ;;  %v281_v9 = vmul.f32 %v2170_v32, %v274_v39 }
  0xc5   : > { %v284_v41 = vpack.c.bf16 %v281_v9, %v280_v40  ;;  %v1544_v40 = vor.u32 %v1808_v33, %v1541_v36  ;;  %v1547_v9 = vld [vmem:[%s2616_s2 + $0x10] sm:$0xf] }
  0xc6   : > { %v1563_v42 = vld [vmem:[#allocation2 + $0x10] sm:$0xf]  ;;  %v1814_v43 = vld [vmem:[#allocation2 + $0x14] sm:$0xf] }
  0xc7   : > { %286 = vst [vmem:[#allocation2] sm:$0xff] %v284_v41  ;;  %v1815_v44 = vld [vmem:[#allocation2 + $0x14] sm:$0xf0]  ;;  %v1565_v47 = vld [vmem:[#allocation2 + $0x18] sm:$0xf0] }
  0xc8   : > { %v1564_v48 = vor.u32 %v1815_v44, %v1563_v42  ;;  %v1568_v51 = vor.u32 %v1814_v43, %v1565_v47  ;;  %v1811_v41 = vld [vmem:[%s2616_s2 + $0x14] sm:$0xf0]  ;;  %v1810_v43 = vld [vmem:[%s2616_s2 + $0x14] sm:$0xf]  ;;  %v1549_v44 = vld [vmem:[%s2616_s2 + $0x18] sm:$0xf0] }
  0xc9   : > { %v431_v52 = vpop.permute.xlu1 %430  ;;  %v270_v53 = vpop.permute.xlu0 %269  ;;  %v1548_v42 = vor.u32 %v1811_v41, %v1547_v9  ;;  %v1552_v47 = vor.u32 %v1810_v43, %v1549_v44 }
  0xca   : > { %v275_v54 = vsel %vm273_vm6, %v266_v37, %v270_v53  ;;  %v277_v55 = vsel %vm273_vm6, %v270_v53, %v266_v37  ;;  %596 = vmatpush.bf16.msra.mxu0 %v1564_v48  ;;  %634 = vmatpush.bf16.msra.mxu2 %v1568_v51 }
  0xcb   : > { %v282_v56 = vmul.f32 %v2167_v26, %v277_v55  ;;  %v283_v57 = vmul.f32 %v2170_v32, %v275_v54 }
  0xcd   : > { %v285_v58 = vpack.c.bf16 %v283_v57, %v282_v56 }
  0xce   : > { %v1555_v20 = vld [vmem:[#allocation2] sm:$0xf]  ;;  %v1812_v24 = vld [vmem:[#allocation2 + $0x4] sm:$0xf] }
  0xcf   : > { %287 = vst [vmem:[#allocation2 + $0x8] sm:$0xff] %v285_v58 }
  0xd1   : > { %v437_v62 = vpop.permute.xlu1 %436  ;;  %v435_v63 = vpop.permute.xlu0 %434 }
  0xd2   : > { %v440_v0 = vsel %vm438_vm7, %v433_v61, %v437_v62  ;;  %v442_v2 = vsel %vm438_vm7, %v437_v62, %v433_v61  ;;  %v439_v6 = vsel %vm438_vm7, %v431_v52, %v435_v63  ;;  %v441_v13 = vsel %vm438_vm7, %v435_v63, %v431_v52 }
  0xd3   : > { %v447_v14 = vmul.f32 %v2188_v59, %v440_v0  ;;  %v448_v15 = vmul.f32 %v2193_v60, %v442_v2  ;;  %v445_v16 = vmul.f32 %v2188_v59, %v439_v6  ;;  %v446_v17 = vmul.f32 %v2193_v60, %v441_v13 }
  0xd5   : > { %v450_v18 = vpack.c.bf16 %v448_v15, %v447_v14  ;;  %v449_v19 = vpack.c.bf16 %v446_v17, %v445_v16 }
  0xd6   : > { %v1813_v23 = vld [vmem:[#allocation2 + $0x4] sm:$0xf0]  ;;  %v1557_v25 = vld [vmem:[#allocation2 + $0x8] sm:$0xf0] }
  0xd7   : > { %452 = vst [vmem:[#allocation2 + $0x88] sm:$0xff] %v450_v18  ;;  %v1556_v27 = vor.u32 %v1813_v23, %v1555_v20  ;;  %v1560_v28 = vor.u32 %v1812_v24, %v1557_v25 }
  0xd8   : > { %451 = vst [vmem:[#allocation2 + $0x80] sm:$0xff] %v449_v19 }
  0xd9   : > { %597 = vmatpush.bf16.msra.mxu0 %v1556_v27  ;;  %635 = vmatpush.bf16.msra.mxu2 %v1560_v28 }
  0xdc   : > { %598 = vmatmul.bf16.vlgmr.msra.gmra.mxu0 %v1540_v29  ;;  %636 = vmatmul.bf16.vlgmr.msra.gmra.mxu2 %v1540_v29 }
  0xde   : > { %v1829_v34 = vld [vmem:[#allocation2 + $0x84] sm:$0xf0]  ;;  %v1621_v35 = vld [vmem:[#allocation2 + $0x88] sm:$0xf0] }
  0xdf   : > { %v1619_v37 = vld [vmem:[#allocation2 + $0x80] sm:$0xf]  ;;  %v1828_v38 = vld [vmem:[#allocation2 + $0x84] sm:$0xf] }
  0xe0   : > { %v1620_v39 = vor.u32 %v1829_v34, %v1619_v37  ;;  %v1624_v8 = vor.u32 %v1828_v38, %v1621_v35 }
  0xe2   : > { %616 = vmatpush.bf16.msra.mxu1 %v1620_v39  ;;  %654 = vmatpush.bf16.msra.mxu3 %v1624_v8 }
  0xe5   : > { %1625 = vmatmul.msk.bf16.vlgmr.msra.gmra.mxu1 %vm583_vm8, %v1544_v40  ;;  %1627 = vmatmul.msk.bf16.vlgmr.msra.gmra.mxu3 %vm583_vm8, %v1544_v40 }
  0xec   : > { %603 = vmatmul.bf16.gmra.mxu0 %v1548_v42  ;;  %641 = vmatmul.bf16.gmra.mxu2 %v1548_v42 }
  0xf5   : > { %1626 = vmatmul.msk.bf16.gmra.mxu1 %vm583_vm8, %v1552_v47  ;;  %1628 = vmatmul.msk.bf16.gmra.mxu3 %vm583_vm8, %v1552_v47 }
 0x159   : > { %v599_v48 = vpop.f32.mrf.mxu0 }
 0x15f   : > { %v637_v51 = vpop.f32.mrf.mxu2 }
 0x161   : > { %v601_v54 = vpop.f32.mrf.mxu0 }
 0x162   : > { %v618_v52 = vpop.f32.mrf.mxu1 }
 0x163   : > { %v2235_v53 = vadd.f32 %v618_v52, %v599_v48 }
 0x165   : > { %794 = vrot.lane.b32.xlu1 %v2235_v53, %s1902_s29  ;;  %814 = vrot.lane.b32.xlu0 %v2235_v53, %s1901_s28 }
 0x166   : > { %834 = vrot.lane.b32.xlu2 %v2235_v53, %s1900_s27 }
 0x167   : > { %v639_v58 = vpop.f32.mrf.mxu2 }
 0x168   : > { %v656_v55 = vpop.f32.mrf.mxu3 }
 0x169   : > { %v2243_v56 = vadd.f32 %v656_v55, %v637_v51  ;;  %v604_v62 = vpop.f32.mrf.mxu0 }
 0x16a   : > { %v620_v57 = vpop.f32.mrf.mxu1 }
 0x16b   : > { %v790_v61 = vpack.c.bf16 %v2243_v56, %v2235_v53  ;;  %v621_v0 = vadd.f32 %v620_v57, %v601_v54 }
 0x16d   : > { %730 = vrot.lane.b32.xlu1 %v2235_v53, %s1905_s8  ;;  %750 = vrot.lane.b32.xlu0 %v2235_v53, %s1904_s7  ;;  %792 = vst [vmem:[#allocation2 + $0x40] sm:$0xff] %v790_v61 }
 0x16e   : > { %770 = vrot.lane.b32.xlu2 %v2235_v53, %s1903_s30 }
 0x16f   : > { %v642_v14 = vpop.f32.mrf.mxu2 }
 0x170   : > { %v658_v63 = vpop.f32.mrf.mxu3 }
 0x171   : > { %v659_v2 = vadd.f32 %v658_v63, %v639_v58  ;;  %v606_v16 = vpop.f32.mrf.mxu0 }
 0x172   : > { %v623_v6 = vpop.f32.mrf.mxu1 }
 0x173   : > { %v791_v13 = vpack.c.bf16 %v659_v2, %v621_v0  ;;  %v624_v17 = vadd.f32 %v623_v6, %v604_v62 }
 0x175   : > { %793 = vst [vmem:[#allocation2 + $0x48] sm:$0xff] %v791_v13  ;;  %798 = vrot.lane.b32.xlu0 %v2243_v56, %s1902_s29  ;;  %838 = vrot.lane.b32.xlu1 %v2243_v56, %s1900_s27 }
 0x176   : > { %818 = vrot.lane.b32.xlu2 %v2243_v56, %s1901_s28 }
 0x177   : > { %v644_v21 = vpop.f32.mrf.mxu2 }
 0x178   : > { %v661_v15 = vpop.f32.mrf.mxu3 }
 0x179   : > { %v662_v23 = vadd.f32 %v661_v15, %v642_v14 }
 0x17a   : > { %v625_v18 = vpop.f32.mrf.mxu1 }
 0x17b   : > { %v626_v19 = vadd.f32 %v625_v18, %v606_v16 }
 0x17d   : > { %734 = vrot.lane.b32.xlu0 %v2243_v56, %s1905_s8  ;;  %774 = vrot.lane.b32.xlu1 %v2243_v56, %s1903_s30  ;;  %v670_v20 = vpack.c.bf16 %v626_v19, %v624_v17 }
 0x17e   : > { %754 = vrot.lane.b32.xlu2 %v2243_v56, %s1904_s7 }
 0x17f   : > { %687 = vmatpush.bf16.msrb.mxu1 %v670_v20 }
 0x180   : > { %v663_v24 = vpop.f32.mrf.mxu3 }
 0x181   : > { %v664_v25 = vadd.f32 %v663_v24, %v644_v21 }
 0x182   : > { %1633 = vmatmul.msk.bf16.vlgmr.msrb.gmra.mxu1 %vm583_vm8, %v2268_v22 }
 0x183   : > { %v671_v27 = vpack.c.bf16 %v664_v25, %v662_v23 }
 0x185   : > { %836 = vrot.lane.b32.xlu0 %v621_v0, %s1900_s27  ;;  %816 = vrot.lane.b32.xlu1 %v621_v0, %s1901_s28 }
 0x186   : > { %796 = vrot.lane.b32.xlu2 %v621_v0, %s1902_s29  ;;  %700 = vmatpush.bf16.msrb.mxu3 %v671_v27 }
 0x189   : > { %1634 = vmatmul.msk.bf16.vlgmr.msrb.gmra.mxu3 %vm583_vm8, %v2268_v22 }
 0x18d   : > { %772 = vrot.lane.b32.xlu0 %v621_v0, %s1903_s30  ;;  %752 = vrot.lane.b32.xlu1 %v621_v0, %s1904_s7 }
 0x18e   : > { %732 = vrot.lane.b32.xlu2 %v621_v0, %s1905_s8 }
 0x195   : > { %712 = vrot.lane.b32.xlu0 %v621_v0, %s1906_s9  ;;  %800 = vrot.lane.b32.xlu1 %v659_v2, %s1902_s29 }
 0x196   : > { %840 = vrot.lane.b32.xlu2 %v659_v2, %s1900_s27 }
 0x19d   : > { %714 = vrot.lane.b32.xlu1 %v2243_v56, %s1906_s9  ;;  %820 = vrot.lane.b32.xlu0 %v659_v2, %s1901_s28 }
 0x19e   : > { %710 = vrot.lane.b32.xlu2 %v2235_v53, %s1906_s9 }
 0x1a5   : > { %736 = vrot.lane.b32.xlu1 %v659_v2, %s1905_s8  ;;  %854 = vrot.lane.b32.xlu0 %v2235_v53, %s1907_s10 }
 0x1a6   : > { %776 = vrot.lane.b32.xlu2 %v659_v2, %s1903_s30 }
 0x1ad   : > { %856 = vrot.lane.b32.xlu1 %v621_v0, %s1907_s10  ;;  %756 = vrot.lane.b32.xlu0 %v659_v2, %s1904_s7 }
 0x1ae   : > { %716 = vrot.lane.b32.xlu2 %v659_v2, %s1906_s9 }
 0x1b5   : > { %860 = vrot.lane.b32.xlu0 %v659_v2, %s1907_s10 }
 0x1b6   : > { %858 = vrot.lane.b32.xlu2 %v2243_v56, %s1907_s10 }
 0x1c0   : > { %v835_v28 = vpop.permute.xlu2 %834 }
 0x1c8   : > { %v771_v29 = vpop.permute.xlu2 %770 }
 0x1d0   : > { %v819_v33 = vpop.permute.xlu2 %818 }
 0x1d7   : > { %v795_v34 = vpop.permute.xlu1 %794  ;;  %v815_v35 = vpop.permute.xlu0 %814 }
 0x1d8   : > { %v822_v36 = vsel %vm392_vm1, %v815_v35, %v819_v33  ;;  %v824_v37 = vsel %vm392_vm1, %v819_v33, %v815_v35  ;;  %v755_v38 = vpop.permute.xlu2 %754 }
 0x1d9   : > { %v826_v39 = vmul.f32 %v822_v36, %v2072_v30  ;;  %v827_v8 = vmul.f32 %v824_v37, %v2075_v31 }
 0x1db   : > { %v830_v40 = vpack.c.bf16 %v827_v8, %v826_v39 }
 0x1dd   : > { %832 = vst [vmem:[#allocation2 + $0x60] sm:$0xff] %v830_v40  ;;  %v666_v40 = vmax.f32 %v2235_v53, 0.0 }
 0x1df   : > { %v731_v9 = vpop.permute.xlu1 %730  ;;  %v751_v41 = vpop.permute.xlu0 %750 }
 0x1e0   : > { %v758_v42 = vsel %vm319_vm4, %v751_v41, %v755_v38  ;;  %v760_v43 = vsel %vm319_vm4, %v755_v38, %v751_v41  ;;  %v2308_v44 = vpop.permute.xlu2 %796 }
 0x1e1   : > { %v762_v47 = vmul.f32 %v760_v43, %v2129_v45  ;;  %v763_v48 = vmul.f32 %v758_v42, %v2132_v46  ;;  %v668_v42 = vadd.f32 %v666_v40, %v1963_v1 }
 0x1e3   : > { %v766_v51 = vpack.c.bf16 %v763_v48, %v762_v47 }
 0x1e5   : > { %768 = vst [vmem:[#allocation2 + $0x20] sm:$0xff] %v766_v51 }
 0x1e7   : > { %v799_v52 = vpop.permute.xlu0 %798  ;;  %v839_v54 = vpop.permute.xlu1 %838 }
 0x1e8   : > { %v802_v55 = vsel %vm369_vm2, %v795_v34, %v799_v52  ;;  %v804_v57 = vsel %vm369_vm2, %v799_v52, %v795_v34  ;;  %v2316_v58 = vpop.permute.xlu2 %732  ;;  %v842_v61 = vsel %vm415_vm0, %v835_v28, %v839_v54  ;;  %v844_v62 = vsel %vm415_vm0, %v839_v54, %v835_v28 }
 0x1e9   : > { %v806_v63 = vmul.f32 %v802_v55, %v2091_v49  ;;  %v807_v0 = vmul.f32 %v804_v57, %v2094_v50  ;;  %v846_v2 = vmul.f32 %v842_v61, %v2049_v10  ;;  %v847_v6 = vmul.f32 %v844_v62, %v2052_v11 }
 0x1eb   : > { %v810_v13 = vpack.c.bf16 %v807_v0, %v806_v63  ;;  %v850_v14 = vpack.c.bf16 %v847_v6, %v846_v2 }
 0x1ed   : > { %812 = vst [vmem:[#allocation2 + $0x50] sm:$0xff] %v810_v13 }
 0x1ee   : > { %852 = vst [vmem:[#allocation2 + $0x70] sm:$0xff] %v850_v14 }
 0x1ef   : > { %v735_v15 = vpop.permute.xlu0 %734  ;;  %v775_v16 = vpop.permute.xlu1 %774 }
 0x1f0   : > { %v738_v17 = vsel %vm296_vm5, %v731_v9, %v735_v15  ;;  %v740_v18 = vsel %vm296_vm5, %v735_v15, %v731_v9  ;;  %v778_v19 = vsel %vm342_vm3, %v771_v29, %v775_v16  ;;  %v780_v20 = vsel %vm342_vm3, %v775_v16, %v771_v29  ;;  %v841_v21 = vpop.permute.xlu2 %840 }
 0x1f1   : > { %v742_v23 = vmul.f32 %v740_v18, %v2148_v3  ;;  %v743_v24 = vmul.f32 %v738_v17, %v2151_v5  ;;  %v782_v25 = vmul.f32 %v780_v20, %v2110_v4  ;;  %v783_v27 = vmul.f32 %v778_v19, %v2113_v12 }
 0x1f3   : > { %v746_v28 = vpack.c.bf16 %v743_v24, %v742_v23  ;;  %v786_v33 = vpack.c.bf16 %v783_v27, %v782_v25 }
 0x1f5   : > { %748 = vst [vmem:[#allocation2 + $0x10] sm:$0xff] %v746_v28  ;;  %v1701_v57 = vld [vmem:[#allocation2 + $0x70] sm:$0xf]  ;;  %v1846_v1 = vld [vmem:[#allocation2 + $0x74] sm:$0xf] }
 0x1f6   : > { %788 = vst [vmem:[#allocation2 + $0x30] sm:$0xff] %v786_v33 }
 0x1f7   : > { %v837_v34 = vpop.permute.xlu0 %836  ;;  %v817_v35 = vpop.permute.xlu1 %816 }
 0x1f8   : > { %v843_v36 = vsel %vm415_vm0, %v837_v34, %v841_v21  ;;  %v845_v29 = vsel %vm415_vm0, %v841_v21, %v837_v34  ;;  %v711_v37 = vpop.permute.xlu2 %710 }
 0x1f9   : > { %v848_v38 = vmul.f32 %v843_v36, %v2049_v10  ;;  %v849_v39 = vmul.f32 %v845_v29, %v2052_v11 }
 0x1fb   : > { %v851_v8 = vpack.c.bf16 %v849_v39, %v848_v38 }
 0x1fd   : > { %853 = vst [vmem:[#allocation2 + $0x78] sm:$0xff] %v851_v8 }
 0x1ff   : > { %v689_v9 = vpop.f32.mrf.mxu1  ;;  %v773_v41 = vpop.permute.xlu0 %772 }
 0x200   : > { %v706_v43 = vmax.f32 %v689_v9, 0.0  ;;  %v2346_v47 = vpop.permute.xlu1 %752  ;;  %v777_v48 = vpop.permute.xlu2 %776 }
 0x201   : > { %v779_v51 = vsel %vm342_vm3, %v773_v41, %v777_v48  ;;  %v781_v52 = vsel %vm342_vm3, %v777_v48, %v773_v41 }
 0x202   : > { %v2352_v54 = vadd.f32 %v706_v43, %v668_v42  ;;  %v784_v55 = vmul.f32 %v781_v52, %v2110_v4  ;;  %v785_v53 = vmul.f32 %v779_v51, %v2113_v12 }
 0x204   : > { %v787_v61 = vpack.c.bf16 %v785_v53, %v784_v55  ;;  %v1847_v62 = vld [vmem:[#allocation2 + $0x74] sm:$0xf0]  ;;  %v1703_v63 = vld [vmem:[#allocation2 + $0x78] sm:$0xf0] }
 0x205   : > { %v1702_v0 = vor.u32 %v1847_v62, %v1701_v57  ;;  %v1706_v2 = vor.u32 %v1846_v1, %v1703_v63 }
 0x206   : > { %789 = vst [vmem:[#allocation2 + $0x38] sm:$0xff] %v787_v61 }
 0x207   : > { %v713_v6 = vpop.permute.xlu0 %712  ;;  %996 = vmatpush.bf16.msrb.mxu0 %v1702_v0  ;;  %1024 = vmatpush.bf16.msrb.mxu2 %v1706_v2  ;;  %v691_v13 = vpop.f32.mrf.mxu1  ;;  %v1693_v0 = vld [vmem:[#allocation2 + $0x60] sm:$0xf] }
 0x208   : > { %v801_v14 = vpop.permute.xlu1 %800  ;;  %v717_v15 = vpop.permute.xlu2 %716  ;;  %v1844_v13 = vld [vmem:[#allocation2 + $0x64] sm:$0xf] }
 0x209   : > { %v803_v16 = vsel %vm369_vm2, %v2308_v44, %v801_v14  ;;  %v805_v17 = vsel %vm369_vm2, %v801_v14, %v2308_v44  ;;  %v719_v18 = vsel %vm273_vm6, %v713_v6, %v717_v15  ;;  %v721_v19 = vsel %vm273_vm6, %v717_v15, %v713_v6 }
 0x20a   : > { %v808_v20 = vmul.f32 %v803_v16, %v2091_v49  ;;  %v809_v21 = vmul.f32 %v805_v17, %v2094_v50  ;;  %v724_v23 = vmul.f32 %v721_v19, %v2167_v26  ;;  %v725_v24 = vmul.f32 %v719_v18, %v2170_v32 }
 0x20c   : > { %v811_v25 = vpack.c.bf16 %v809_v21, %v808_v20  ;;  %v727_v27 = vpack.c.bf16 %v725_v24, %v724_v23  ;;  %v2370_v28 = vpop.f32.mrf.mxu3  ;;  %v1685_v21 = vld [vmem:[#allocation2 + $0x50] sm:$0xf]  ;;  %v1842_v23 = vld [vmem:[#allocation2 + $0x54] sm:$0xf] }
 0x20e   : > { %813 = vst [vmem:[#allocation2 + $0x58] sm:$0xff] %v811_v25 }
 0x20f   : > { %729 = vst [vmem:[#allocation2 + $0x8] sm:$0xff] %v727_v27  ;;  %v821_v44 = vpop.permute.xlu0 %820 }
 0x210   : > { %v715_v33 = vpop.permute.xlu1 %714  ;;  %v823_v34 = vsel %vm392_vm1, %v817_v35, %v821_v44  ;;  %v825_v36 = vsel %vm392_vm1, %v821_v44, %v817_v35  ;;  %v859_v35 = vpop.permute.xlu2 %858 }
 0x211   : > { %v718_v29 = vsel %vm273_vm6, %v711_v37, %v715_v33  ;;  %v720_v38 = vsel %vm273_vm6, %v715_v33, %v711_v37  ;;  %v828_v39 = vmul.f32 %v823_v34, %v2072_v30  ;;  %v829_v8 = vmul.f32 %v825_v36, %v2075_v31  ;;  %v1841_v33 = vld [vmem:[#allocation2 + $0x44] sm:$0xf0]  ;;  %v1679_v34 = vld [vmem:[#allocation2 + $0x48] sm:$0xf0] }
 0x212   : > { %v722_v40 = vmul.f32 %v720_v38, %v2167_v26  ;;  %v723_v9 = vmul.f32 %v718_v29, %v2170_v32  ;;  %v1677_v29 = vld [vmem:[#allocation2 + $0x40] sm:$0xf]  ;;  %v1840_v38 = vld [vmem:[#allocation2 + $0x44] sm:$0xf] }
 0x213   : > { %v831_v41 = vpack.c.bf16 %v829_v8, %v828_v39  ;;  %v1678_v39 = vor.u32 %v1841_v33, %v1677_v29  ;;  %v1682_v8 = vor.u32 %v1840_v38, %v1679_v34 }
 0x214   : > { %v726_v42 = vpack.c.bf16 %v723_v9, %v722_v40  ;;  %v704_v43 = vpop.f32.mrf.mxu3  ;;  %v1839_v40 = vld [vmem:[#allocation2 + $0x34] sm:$0xf0] }
 0x215   : > { %833 = vst [vmem:[#allocation2 + $0x68] sm:$0xff] %v831_v41  ;;  %v1843_v17 = vld [vmem:[#allocation2 + $0x54] sm:$0xf0] }
 0x216   : > { %728 = vst [vmem:[#allocation2] sm:$0xff] %v726_v42  ;;  %v1686_v27 = vor.u32 %v1843_v17, %v1685_v21  ;;  %v1637_v17 = vld [vmem:[%s2617_s3] sm:$0xf] }
 0x217   : > { %v855_v48 = vpop.permute.xlu0 %854 }
 0x218   : > { %v737_v51 = vpop.permute.xlu1 %736  ;;  %v862_v52 = vsel %vm438_vm7, %v855_v48, %v859_v35  ;;  %v864_v37 = vsel %vm438_vm7, %v859_v35, %v855_v48  ;;  %v1669_v35 = vld [vmem:[#allocation2 + $0x30] sm:$0xf]  ;;  %v1838_v48 = vld [vmem:[#allocation2 + $0x34] sm:$0xf] }
 0x219   : > { %v739_v55 = vsel %vm296_vm5, %v2316_v58, %v737_v51  ;;  %v741_v53 = vsel %vm296_vm5, %v737_v51, %v2316_v58  ;;  %v866_v57 = vmul.f32 %v2188_v59, %v862_v52  ;;  %v867_v61 = vmul.f32 %v2193_v60, %v864_v37  ;;  %v1687_v58 = vld [vmem:[#allocation2 + $0x58] sm:$0xf0] }
 0x21a   : > { %v744_v62 = vmul.f32 %v741_v53, %v2148_v3  ;;  %v745_v1 = vmul.f32 %v739_v55, %v2151_v5  ;;  %v1690_v44 = vor.u32 %v1842_v23, %v1687_v58  ;;  %v1670_v37 = vor.u32 %v1839_v40, %v1669_v35 }
 0x21b   : > { %v870_v63 = vpack.c.bf16 %v867_v61, %v866_v57  ;;  %v1661_v57 = vld [vmem:[#allocation2 + $0x20] sm:$0xf] }
 0x21c   : > { %v747_v2 = vpack.c.bf16 %v745_v1, %v744_v62  ;;  %v1845_v6 = vld [vmem:[#allocation2 + $0x64] sm:$0xf0]  ;;  %v1695_v14 = vld [vmem:[#allocation2 + $0x68] sm:$0xf0]  ;;  %v1836_v62 = vld [vmem:[#allocation2 + $0x24] sm:$0xf] }
 0x21d   : > { %872 = vst [vmem:[#allocation2 + $0x80] sm:$0xff] %v870_v63  ;;  %v1694_v15 = vor.u32 %v1845_v6, %v1693_v0  ;;  %v1698_v16 = vor.u32 %v1844_v13, %v1695_v14  ;;  %v1653_v13 = vld [vmem:[#allocation2 + $0x10] sm:$0xf]  ;;  %v1834_v14 = vld [vmem:[#allocation2 + $0x14] sm:$0xf] }
 0x21e   : > { %749 = vst [vmem:[#allocation2 + $0x18] sm:$0xff] %v747_v2  ;;  %v1645_v58 = vld [vmem:[#allocation2] sm:$0xf]  ;;  %v1832_v23 = vld [vmem:[#allocation2 + $0x4] sm:$0xf] }
 0x21f   : > { %v757_v18 = vpop.permute.xlu0 %756  ;;  %997 = vmatpush.bf16.msrb.mxu0 %v1694_v15  ;;  %1025 = vmatpush.bf16.msrb.mxu2 %v1698_v16 }
 0x220   : > { %v759_v19 = vsel %vm319_vm4, %v2346_v47, %v757_v18  ;;  %v761_v20 = vsel %vm319_vm4, %v757_v18, %v2346_v47  ;;  %v1671_v47 = vld [vmem:[#allocation2 + $0x38] sm:$0xf0]  ;;  %v857_v9 = vpop.permute.xlu1 %856  ;;  %v1833_v18 = vld [vmem:[#allocation2 + $0x4] sm:$0xf0] }
 0x221   : > { %v764_v24 = vmul.f32 %v761_v20, %v2129_v45  ;;  %v765_v25 = vmul.f32 %v759_v19, %v2132_v46  ;;  %v1674_v55 = vor.u32 %v1838_v48, %v1671_v47  ;;  %v1831_v19 = vld [vmem:[%s2617_s3 + $0x4] sm:$0xf0]  ;;  %v1830_v20 = vld [vmem:[%s2617_s3 + $0x4] sm:$0xf]  ;;  %v1646_v33 = vor.u32 %v1833_v18, %v1645_v58 }
 0x223   : > { %v767_v36 = vpack.c.bf16 %v765_v25, %v764_v24  ;;  %998 = vmatpush.bf16.msrb.mxu0 %v1686_v27  ;;  %1026 = vmatpush.bf16.msrb.mxu2 %v1690_v44  ;;  %v1639_v24 = vld [vmem:[%s2617_s3 + $0x8] sm:$0xf0] }
 0x224   : > { %v1709_v21 = vld [vmem:[#allocation2 + $0x80] sm:$0xf]  ;;  %v1848_v27 = vld [vmem:[#allocation2 + $0x84] sm:$0xf] }
 0x225   : > { %769 = vst [vmem:[#allocation2 + $0x28] sm:$0xff] %v767_v36  ;;  %v1835_v2 = vld [vmem:[#allocation2 + $0x14] sm:$0xf0]  ;;  %v1655_v6 = vld [vmem:[#allocation2 + $0x18] sm:$0xf0] }
 0x226   : > { %v1654_v15 = vor.u32 %v1835_v2, %v1653_v13  ;;  %v1658_v16 = vor.u32 %v1834_v14, %v1655_v6  ;;  %v1647_v36 = vld [vmem:[#allocation2 + $0x8] sm:$0xf0] }
 0x227   : > { %v861_v41 = vpop.permute.xlu0 %860  ;;  %999 = vmatpush.bf16.msrb.mxu0 %v1678_v39  ;;  %1027 = vmatpush.bf16.msrb.mxu2 %v1682_v8  ;;  %v1650_v38 = vor.u32 %v1832_v23, %v1647_v36  ;;  %v1638_v39 = vor.u32 %v1831_v19, %v1637_v17  ;;  %v1642_v8 = vor.u32 %v1830_v20, %v1639_v24 }
 0x228   : > { %v863_v42 = vsel %vm438_vm7, %v857_v9, %v861_v41  ;;  %v865_v43 = vsel %vm438_vm7, %v861_v41, %v857_v9 }
 0x229   : > { %v868_v51 = vmul.f32 %v2188_v59, %v863_v42  ;;  %v869_v52 = vmul.f32 %v2193_v60, %v865_v43 }
 0x22b   : > { %v871_v53 = vpack.c.bf16 %v869_v52, %v868_v51  ;;  %1000 = vmatpush.bf16.msrb.mxu0 %v1670_v37  ;;  %1028 = vmatpush.bf16.msrb.mxu2 %v1674_v55 }
 0x22c   : > { %v1837_v61 = vld [vmem:[#allocation2 + $0x24] sm:$0xf0]  ;;  %v1663_v1 = vld [vmem:[#allocation2 + $0x28] sm:$0xf0] }
 0x22d   : > { %873 = vst [vmem:[#allocation2 + $0x88] sm:$0xff] %v871_v53  ;;  %v1662_v63 = vor.u32 %v1837_v61, %v1661_v57  ;;  %v1666_v0 = vor.u32 %v1836_v62, %v1663_v1 }
 0x22f   : > { %1001 = vmatpush.bf16.msrb.mxu0 %v1662_v63  ;;  %1029 = vmatpush.bf16.msrb.mxu2 %v1666_v0 }
 0x233   : > { %1002 = vmatpush.bf16.msrb.mxu0 %v1654_v15  ;;  %1030 = vmatpush.bf16.msrb.mxu2 %v1658_v16 }
 0x234   : > { %v1849_v25 = vld [vmem:[#allocation2 + $0x84] sm:$0xf0]  ;;  %v1711_v44 = vld [vmem:[#allocation2 + $0x88] sm:$0xf0] }
 0x235   : > { %v1710_v34 = vor.u32 %v1849_v25, %v1709_v21  ;;  %v1714_v29 = vor.u32 %v1848_v27, %v1711_v44 }
 0x237   : > { %1003 = vmatpush.bf16.msrb.mxu0 %v1646_v33  ;;  %1017 = vmatpush.bf16.msra.mxu1 %v1710_v34 }
 0x238   : > { %1031 = vmatpush.bf16.msrb.mxu2 %v1650_v38  ;;  %1045 = vmatpush.bf16.msra.mxu3 %v1714_v29 }
 0x23a   : > { %1004 = vmatmul.bf16.vlgmr.msrb.gmra.mxu0 %v1638_v39  ;;  %1715 = vmatmul.msk.bf16.vlgmr.msra.gmra.mxu1 %vm583_vm8, %v1642_v8 }
 0x23b   : > { %1032 = vmatmul.bf16.vlgmr.msrb.gmra.mxu2 %v1638_v39  ;;  %1716 = vmatmul.msk.bf16.vlgmr.msra.gmra.mxu3 %vm583_vm8, %v1642_v8 }
 0x2b7   : > { %v1005_v40 = vpop.f32.mrf.mxu0  ;;  %v1019_v47 = vpop.f32.mrf.mxu1 }
 0x2b8   : > { %v1020_v9 = vadd.f32 %v1019_v47, %v1005_v40 }
 0x2ba   : > { %1176 = vrot.lane.b32.xlu0 %v1020_v9, %s1902_s29  ;;  %1196 = vrot.lane.b32.xlu2 %v1020_v9, %s1901_s28 }
 0x2bb   : > { %1216 = vrot.lane.b32.xlu1 %v1020_v9, %s1900_s27 }
 0x2be   : > { %v1033_v41 = vpop.f32.mrf.mxu2  ;;  %v1047_v42 = vpop.f32.mrf.mxu3 }
 0x2bf   : > { %v1048_v43 = vadd.f32 %v1047_v42, %v1033_v41  ;;  %v1007_v48 = vpop.f32.mrf.mxu0  ;;  %v1021_v51 = vpop.f32.mrf.mxu1 }
 0x2c0   : > { %v1022_v55 = vadd.f32 %v1021_v51, %v1007_v48 }
 0x2c1   : > { %v1052_v35 = vpack.c.bf16 %v1048_v43, %v1020_v9 }
 0x2c2   : > { %1236 = vrot.lane.b32.xlu0 %v1020_v9, %s1907_s10  ;;  %1134 = vrot.lane.b32.xlu2 %v1020_v9, %s1904_s7 }
 0x2c3   : > { %1154 = vrot.lane.b32.xlu1 %v1020_v9, %s1903_s30  ;;  %1174 = vst [vmem:[#allocation2 + $0x40] sm:$0xff] %v1052_v35  ;;  %v1056_v61 = vunpack.c.l.b16 %v1052_v35  ;;  %v1057_v1 = vunpack.c.h.b16 %v1052_v35 }
 0x2c6   : > { %v1035_v52 = vpop.f32.mrf.mxu2  ;;  %v1049_v37 = vpop.f32.mrf.mxu3 }
 0x2c7   : > { %v1050_v53 = vadd.f32 %v1049_v37, %v1035_v52 }
 0x2c9   : > { %v1053_v57 = vpack.c.bf16 %v1050_v53, %v1022_v55 }
 0x2ca   : > { %1180 = vrot.lane.b32.xlu2 %v1048_v43, %s1902_s29  ;;  %1220 = vrot.lane.b32.xlu0 %v1048_v43, %s1900_s27 }
 0x2cb   : > { %1200 = vrot.lane.b32.xlu1 %v1048_v43, %s1901_s28  ;;  %v1058_v62 = vunpack.c.l.b16 %v1053_v57  ;;  %1175 = vst [vmem:[#allocation2 + $0x48] sm:$0xff] %v1053_v57  ;;  %v1059_v63 = vunpack.c.h.b16 %v1053_v57 }
 0x2cd   : > { %v1060_v0 = vpack.c.b16 %v1058_v62, %v1056_v61  ;;  %v1061_v2 = vpack.c.b16 %v1059_v63, %v1057_v1 }
 0x2cf   : > { %1071 = vmatpush.bf16.msrb.mxu1 %v1060_v0  ;;  %1084 = vmatpush.bf16.msrb.mxu3 %v1061_v2 }
 0x2d2   : > { %1717 = vmatmul.msk.bf16.vlgmr.msrb.gmra.mxu1 %vm583_vm8, %v2268_v22  ;;  %1718 = vmatmul.msk.bf16.vlgmr.msrb.gmra.mxu3 %vm583_vm8, %v2268_v22 }
 0x2d3   : > { %1240 = vrot.lane.b32.xlu2 %v1048_v43, %s1907_s10  ;;  %1138 = vrot.lane.b32.xlu1 %v1048_v43, %s1904_s7 }
 0x2d4   : > { %1158 = vrot.lane.b32.xlu0 %v1048_v43, %s1903_s30 }
 0x2db   : > { %1218 = vrot.lane.b32.xlu2 %v1022_v55, %s1900_s27  ;;  %1178 = vrot.lane.b32.xlu1 %v1022_v55, %s1902_s29 }
 0x2dc   : > { %1198 = vrot.lane.b32.xlu0 %v1022_v55, %s1901_s28 }
 0x2e3   : > { %1156 = vrot.lane.b32.xlu2 %v1022_v55, %s1903_s30  ;;  %1238 = vrot.lane.b32.xlu1 %v1022_v55, %s1907_s10 }
 0x2e4   : > { %1136 = vrot.lane.b32.xlu0 %v1022_v55, %s1904_s7 }
 0x2eb   : > { %1116 = vrot.lane.b32.xlu2 %v1022_v55, %s1905_s8  ;;  %1222 = vrot.lane.b32.xlu1 %v1050_v53, %s1900_s27 }
 0x2ec   : > { %1182 = vrot.lane.b32.xlu0 %v1050_v53, %s1902_s29 }
 0x2f3   : > { %1202 = vrot.lane.b32.xlu2 %v1050_v53, %s1901_s28  ;;  %1114 = vrot.lane.b32.xlu1 %v1020_v9, %s1905_s8 }
 0x2f4   : > { %1118 = vrot.lane.b32.xlu0 %v1048_v43, %s1905_s8 }
 0x2fb   : > { %1094 = vrot.lane.b32.xlu2 %v1020_v9, %s1906_s9  ;;  %1160 = vrot.lane.b32.xlu1 %v1050_v53, %s1903_s30 }
 0x2fc   : > { %1242 = vrot.lane.b32.xlu0 %v1050_v53, %s1907_s10 }
 0x303   : > { %1140 = vrot.lane.b32.xlu2 %v1050_v53, %s1904_s7  ;;  %1120 = vrot.lane.b32.xlu1 %v1050_v53, %s1905_s8 }
 0x304   : > { %1096 = vrot.lane.b32.xlu0 %v1022_v55, %s1906_s9 }
 0x30b   : > { %1100 = vrot.lane.b32.xlu2 %v1050_v53, %s1906_s9  ;;  %1098 = vrot.lane.b32.xlu1 %v1048_v43, %s1906_s9 }
 0x314   : > { %v1197_v22 = vpop.permute.xlu2 %1196 }
 0x31c   : > { %v1135_v6 = vpop.permute.xlu2 %1134 }
 0x324   : > { %v1181_v13 = vpop.permute.xlu2 %1180 }
 0x32c   : > { %v1177_v14 = vpop.permute.xlu0 %1176 }
 0x32d   : > { %v1184_v15 = vsel %vm369_vm2, %v1177_v14, %v1181_v13  ;;  %v1186_v16 = vsel %vm369_vm2, %v1181_v13, %v1177_v14  ;;  %v1217_v17 = vpop.permute.xlu1 %1216  ;;  %v1241_v58 = vpop.permute.xlu2 %1240 }
 0x32e   : > { %v1188_v18 = vmul.f32 %v1184_v15, %v2091_v49  ;;  %v1189_v19 = vmul.f32 %v1186_v16, %v2094_v50 }
 0x330   : > { %v1192_v20 = vpack.c.bf16 %v1189_v19, %v1188_v18  ;;  %v667_v18 = vmax.f32 %v2243_v56, 0.0 }
 0x332   : > { %1194 = vst [vmem:[#allocation2 + $0x50] sm:$0xff] %v1192_v20 }
 0x334   : > { %v1237_v21 = vpop.permute.xlu0 %1236 }
 0x335   : > { %v1244_v23 = vsel %vm438_vm7, %v1237_v21, %v1241_v58  ;;  %v1246_v24 = vsel %vm438_vm7, %v1241_v58, %v1237_v21  ;;  %v1155_v25 = vpop.permute.xlu1 %1154  ;;  %v2472_v27 = vpop.permute.xlu2 %1218  ;;  %v707_v21 = vmax.f32 %v2370_v28, 0.0 }
 0x336   : > { %v1248_v44 = vmul.f32 %v2188_v59, %v1244_v23  ;;  %v1249_v33 = vmul.f32 %v2193_v60, %v1246_v24  ;;  %v1888_v23 = vld [vmem:[%s1957_s26 + $0x8] sm:$0xff] }
 0x337   : > { %v669_v24 = vadd.f32 %v1888_v23, %v667_v18  ;;  %v1889_v23 = vld [vmem:[%s2615_s1 + $0x10] ss:$0 sm:$0xff] }
 0x338   : > { %v1252_v34 = vpack.c.bf16 %v1249_v33, %v1248_v44 }
 0x33a   : > { %1254 = vst [vmem:[#allocation2 + $0x80] sm:$0xff] %v1252_v34 }
 0x33c   : > { %v1221_v36 = vpop.permute.xlu0 %1220 }
 0x33d   : > { %v2476_v29 = vpop.permute.xlu2 %1156  ;;  %v1201_v38 = vpop.permute.xlu1 %1200  ;;  %v1224_v39 = vsel %vm415_vm0, %v1217_v17, %v1221_v36  ;;  %v1226_v8 = vsel %vm415_vm0, %v1221_v36, %v1217_v17 }
 0x33e   : > { %v1204_v40 = vsel %vm392_vm1, %v1197_v22, %v1201_v38  ;;  %v1206_v59 = vsel %vm392_vm1, %v1201_v38, %v1197_v22  ;;  %v1228_v60 = vmul.f32 %v1224_v39, %v2049_v10  ;;  %v1229_v47 = vmul.f32 %v1226_v8, %v2052_v11 }
 0x33f   : > { %v1208_v9 = vmul.f32 %v1204_v40, %v2072_v30  ;;  %v1209_v41 = vmul.f32 %v1206_v59, %v2075_v31 }
 0x340   : > { %v1232_v42 = vpack.c.bf16 %v1229_v47, %v1228_v60 }
 0x341   : > { %v1212_v43 = vpack.c.bf16 %v1209_v41, %v1208_v9 }
 0x342   : > { %1234 = vst [vmem:[#allocation2 + $0x70] sm:$0xff] %v1232_v42 }
 0x343   : > { %1214 = vst [vmem:[#allocation2 + $0x60] sm:$0xff] %v1212_v43 }
 0x345   : > { %v2490_v35 = vpop.permute.xlu2 %1116  ;;  %v1139_v48 = vpop.permute.xlu1 %1138 }
 0x346   : > { %v1142_v51 = vsel %vm319_vm4, %v1135_v6, %v1139_v48  ;;  %v1144_v52 = vsel %vm319_vm4, %v1139_v48, %v1135_v6  ;;  %v1159_v37 = vpop.permute.xlu0 %1158 }
 0x347   : > { %v1146_v55 = vmul.f32 %v1144_v52, %v2129_v45  ;;  %v1147_v53 = vmul.f32 %v1142_v51, %v2132_v46  ;;  %v1162_v57 = vsel %vm342_vm3, %v1155_v25, %v1159_v37  ;;  %v1164_v61 = vsel %vm342_vm3, %v1159_v37, %v1155_v25 }
 0x348   : > { %v1166_v62 = vmul.f32 %v1164_v61, %v2110_v4  ;;  %v1167_v1 = vmul.f32 %v1162_v57, %v2113_v12 }
 0x349   : > { %v1150_v63 = vpack.c.bf16 %v1147_v53, %v1146_v55 }
 0x34a   : > { %v1170_v0 = vpack.c.bf16 %v1167_v1, %v1166_v62 }
 0x34b   : > { %1152 = vst [vmem:[#allocation2 + $0x20] sm:$0xff] %v1150_v63 }
 0x34c   : > { %1172 = vst [vmem:[#allocation2 + $0x30] sm:$0xff] %v1170_v0 }
 0x34d   : > { %v1203_v2 = vpop.permute.xlu2 %1202  ;;  %v1179_v22 = vpop.permute.xlu1 %1178 }
 0x34e   : > { %v1199_v6 = vpop.permute.xlu0 %1198 }
 0x34f   : > { %v1205_v13 = vsel %vm392_vm1, %v1199_v6, %v1203_v2  ;;  %v1207_v14 = vsel %vm392_vm1, %v1203_v2, %v1199_v6  ;;  %v1073_v15 = vpop.f32.mrf.mxu1 }
 0x350   : > { %v1210_v16 = vmul.f32 %v1205_v13, %v2072_v30  ;;  %v1211_v17 = vmul.f32 %v1207_v14, %v2075_v31  ;;  %v1090_v58 = vmax.f32 %v1073_v15, 0.0  ;;  %v709_v30 = vadd.f32 %v707_v21, %v669_v24  ;;  %v1864_v21 = vld [vmem:[#allocation2 + $0x64] sm:$0xf]  ;;  %v1890_v24 = vld [vmem:[%s2615_s1 + $0x18] ss:$0 sm:$0xff] }
 0x352   : > { %v1213_v19 = vpack.c.bf16 %v1211_v17, %v1210_v16  ;;  %v2512_v20 = vadd.f32 %v1090_v58, %v2352_v54 }
 0x354   : > { %1215 = vst [vmem:[#allocation2 + $0x68] sm:$0xff] %v1213_v19  ;;  %v1777_v19 = vld [vmem:[#allocation2 + $0x60] sm:$0xf] }
 0x355   : > { %v2516_v25 = vpop.permute.xlu2 %1094  ;;  %v1239_v44 = vpop.permute.xlu1 %1238 }
 0x356   : > { %v1137_v33 = vpop.permute.xlu0 %1136  ;;  %v1086_v34 = vpop.f32.mrf.mxu3 }
 0x357   : > { %v1091_v36 = vmax.f32 %v1086_v34, 0.0  ;;  %v1075_v31 = vpop.f32.mrf.mxu1 }
 0x359   : > { %v2518_v38 = vadd.f32 %v1091_v36, %v709_v30 }
 0x35b   : > { %v1779_v6 = vld [vmem:[#allocation2 + $0x68] sm:$0xf0] }
 0x35d   : > { %v1141_v56 = vpop.permute.xlu2 %1140  ;;  %v1223_v39 = vpop.permute.xlu1 %1222 }
 0x35e   : > { %v1143_v54 = vsel %vm319_vm4, %v1137_v33, %v1141_v56  ;;  %v1145_v28 = vsel %vm319_vm4, %v1141_v56, %v1137_v33  ;;  %v1225_v8 = vsel %vm415_vm0, %v2472_v27, %v1223_v39  ;;  %v1227_v40 = vsel %vm415_vm0, %v1223_v39, %v2472_v27  ;;  %v1183_v59 = vpop.permute.xlu0 %1182  ;;  %v1088_v60 = vpop.f32.mrf.mxu3  ;;  %v1862_v56 = vld [vmem:[#allocation2 + $0x54] sm:$0xf] }
 0x35f   : > { %v1148_v47 = vmul.f32 %v1145_v28, %v2129_v45  ;;  %v1149_v9 = vmul.f32 %v1143_v54, %v2132_v46  ;;  %v1230_v41 = vmul.f32 %v1225_v8, %v2049_v10  ;;  %v1231_v42 = vmul.f32 %v1227_v40, %v2052_v11  ;;  %v1861_v8 = vld [vmem:[#allocation2 + $0x44] sm:$0xf0]  ;;  %v1763_v40 = vld [vmem:[#allocation2 + $0x48] sm:$0xf0] }
 0x360   : > { %v1185_v43 = vsel %vm369_vm2, %v1179_v22, %v1183_v59  ;;  %v1187_v48 = vsel %vm369_vm2, %v1183_v59, %v1179_v22  ;;  %v1865_v22 = vld [vmem:[#allocation2 + $0x64] sm:$0xf0] }
 0x361   : > { %v1151_v51 = vpack.c.bf16 %v1149_v9, %v1148_v47  ;;  %v1233_v52 = vpack.c.bf16 %v1231_v42, %v1230_v41  ;;  %v1190_v27 = vmul.f32 %v1185_v43, %v2091_v49  ;;  %v1191_v37 = vmul.f32 %v1187_v48, %v2094_v50  ;;  %v1785_v49 = vld [vmem:[#allocation2 + $0x70] sm:$0xf]  ;;  %v1866_v50 = vld [vmem:[#allocation2 + $0x74] sm:$0xf] }
 0x362   : > { %v1778_v33 = vor.u32 %v1865_v22, %v1777_v19 }
 0x363   : > { %1153 = vst [vmem:[#allocation2 + $0x28] sm:$0xff] %v1151_v51  ;;  %v1193_v45 = vpack.c.bf16 %v1191_v37, %v1190_v27  ;;  %v1761_v51 = vld [vmem:[#allocation2 + $0x40] sm:$0xf] }
 0x364   : > { %1235 = vst [vmem:[#allocation2 + $0x78] sm:$0xff] %v1233_v52  ;;  %v1860_v52 = vld [vmem:[#allocation2 + $0x44] sm:$0xf] }
 0x365   : > { %1195 = vst [vmem:[#allocation2 + $0x58] sm:$0xff] %v1193_v45  ;;  %v1115_v46 = vpop.permute.xlu1 %1114  ;;  %v1101_v59 = vpop.permute.xlu2 %1100  ;;  %v1766_v45 = vor.u32 %v1860_v52, %v1763_v40 }
 0x366   : > { %v1119_v10 = vpop.permute.xlu0 %1118 }
 0x367   : > { %v1122_v11 = vsel %vm296_vm5, %v1115_v46, %v1119_v10  ;;  %v1124_v55 = vsel %vm296_vm5, %v1119_v10, %v1115_v46  ;;  %v1753_v10 = vld [vmem:[#allocation2 + $0x30] sm:$0xf] }
 0x368   : > { %v1126_v53 = vmul.f32 %v1124_v55, %v2148_v3  ;;  %v1127_v57 = vmul.f32 %v1122_v11, %v2151_v5  ;;  %v1793_v11 = vld [vmem:[#allocation2 + $0x80] sm:$0xf]  ;;  %v1868_v55 = vld [vmem:[#allocation2 + $0x84] sm:$0xf] }
 0x36a   : > { %v1130_v61 = vpack.c.bf16 %v1127_v57, %v1126_v53 }
 0x36b   : > { %v1867_v62 = vld [vmem:[#allocation2 + $0x74] sm:$0xf0]  ;;  %v1787_v1 = vld [vmem:[#allocation2 + $0x78] sm:$0xf0] }
 0x36c   : > { %1132 = vst [vmem:[#allocation2 + $0x10] sm:$0xff] %v1130_v61  ;;  %v1786_v63 = vor.u32 %v1867_v62, %v1785_v49  ;;  %v1790_v0 = vor.u32 %v1866_v50, %v1787_v1  ;;  %v1863_v30 = vld [vmem:[#allocation2 + $0x54] sm:$0xf0]  ;;  %v1771_v36 = vld [vmem:[#allocation2 + $0x58] sm:$0xf0] }
 0x36d   : > { %v1161_v2 = vpop.permute.xlu1 %1160  ;;  %v1774_v54 = vor.u32 %v1862_v56, %v1771_v36  ;;  %v1723_v49 = vld [vmem:[%s2618_s4 + $0x8] sm:$0xf0] }
 0x36e   : > { %v1163_v13 = vsel %vm342_vm3, %v2476_v29, %v1161_v2  ;;  %v1165_v14 = vsel %vm342_vm3, %v1161_v2, %v2476_v29  ;;  %1378 = vmatpush.bf16.msra.mxu0 %v1786_v63  ;;  %v1243_v15 = vpop.permute.xlu0 %1242  ;;  %1406 = vmatpush.bf16.msra.mxu1 %v1790_v0 }
 0x36f   : > { %v1168_v16 = vmul.f32 %v1165_v14, %v2110_v4  ;;  %v1169_v17 = vmul.f32 %v1163_v13, %v2113_v12  ;;  %v1245_v58 = vsel %vm438_vm7, %v1239_v44, %v1243_v15  ;;  %v1247_v18 = vsel %vm438_vm7, %v1243_v15, %v1239_v44  ;;  %v1769_v44 = vld [vmem:[#allocation2 + $0x50] sm:$0xf] }
 0x370   : > { %v1250_v29 = vmul.f32 %v1889_v23, %v1245_v58  ;;  %v1251_v4 = vmul.f32 %v1890_v24, %v1247_v18  ;;  %v1782_v12 = vor.u32 %v1864_v21, %v1779_v6  ;;  %v1770_v39 = vor.u32 %v1863_v30, %v1769_v44  ;;  %v1857_v6 = vld [vmem:[#allocation2 + $0x24] sm:$0xf0]  ;;  %v1745_v18 = vld [vmem:[#allocation2 + $0x20] sm:$0xf]  ;;  %v1856_v21 = vld [vmem:[#allocation2 + $0x24] sm:$0xf] }
 0x371   : > { %v1171_v34 = vpack.c.bf16 %v1169_v17, %v1168_v16  ;;  %v1747_v16 = vld [vmem:[#allocation2 + $0x28] sm:$0xf0]  ;;  %v1746_v19 = vor.u32 %v1857_v6, %v1745_v18 }
 0x372   : > { %v1253_v31 = vpack.c.bf16 %v1251_v4, %v1250_v29  ;;  %1379 = vmatpush.bf16.msra.mxu0 %v1778_v33  ;;  %1407 = vmatpush.bf16.msra.mxu1 %v1782_v12  ;;  %v1750_v29 = vor.u32 %v1856_v21, %v1747_v16  ;;  %v1721_v12 = vld [vmem:[%s2618_s4] sm:$0xf] }
 0x373   : > { %1173 = vst [vmem:[#allocation2 + $0x38] sm:$0xff] %v1171_v34  ;;  %v1737_v24 = vld [vmem:[#allocation2 + $0x10] sm:$0xf]  ;;  %v1851_v34 = vld [vmem:[%s2618_s4 + $0x4] sm:$0xf0] }
 0x374   : > { %1255 = vst [vmem:[#allocation2 + $0x88] sm:$0xff] %v1253_v31 }
 0x375   : > { %v1121_v28 = vpop.permute.xlu1 %1120 }
 0x376   : > { %v1123_v60 = vsel %vm296_vm5, %v2490_v35, %v1121_v28  ;;  %v1125_v47 = vsel %vm296_vm5, %v1121_v28, %v2490_v35  ;;  %1380 = vmatpush.bf16.msra.mxu0 %v1770_v39  ;;  %v1097_v9 = vpop.permute.xlu0 %1096  ;;  %1408 = vmatpush.bf16.msra.mxu1 %v1774_v54  ;;  %v1762_v35 = vor.u32 %v1861_v8, %v1761_v51 }
 0x377   : > { %v1128_v41 = vmul.f32 %v1125_v47, %v2148_v3  ;;  %v1129_v42 = vmul.f32 %v1123_v60, %v2151_v5  ;;  %v1103_v43 = vsel %vm273_vm6, %v1097_v9, %v1101_v59  ;;  %v1105_v48 = vsel %vm273_vm6, %v1101_v59, %v1097_v9  ;;  %v1858_v3 = vld [vmem:[#allocation2 + $0x34] sm:$0xf]  ;;  %v1850_v5 = vld [vmem:[%s2618_s4 + $0x4] sm:$0xf] }
 0x378   : > { %v1108_v27 = vmul.f32 %v1105_v48, %v2167_v26  ;;  %v1109_v37 = vmul.f32 %v1103_v43, %v2170_v32  ;;  %v1726_v13 = vor.u32 %v1850_v5, %v1723_v49  ;;  %v1722_v39 = vor.u32 %v1851_v34, %v1721_v12 }
 0x379   : > { %v1131_v46 = vpack.c.bf16 %v1129_v42, %v1128_v41 }
 0x37a   : > { %v1111_v53 = vpack.c.bf16 %v1109_v37, %v1108_v27  ;;  %1381 = vmatpush.bf16.msra.mxu0 %v1762_v35  ;;  %1409 = vmatpush.bf16.msra.mxu1 %v1766_v45  ;;  %v1859_v57 = vld [vmem:[#allocation2 + $0x34] sm:$0xf0]  ;;  %v1755_v61 = vld [vmem:[#allocation2 + $0x38] sm:$0xf0]  ;;  %v1891_v27 = vld [vmem:[%s2619_s5] sm:$0xff] }
 0x37b   : > { %1133 = vst [vmem:[#allocation2 + $0x18] sm:$0xff] %v1131_v46  ;;  %v1754_v62 = vor.u32 %v1859_v57, %v1753_v10  ;;  %v1869_v50 = vld [vmem:[#allocation2 + $0x84] sm:$0xf0]  ;;  %v1758_v1 = vor.u32 %v1858_v3, %v1755_v61  ;;  %v1795_v63 = vld [vmem:[#allocation2 + $0x88] sm:$0xf0] }
 0x37c   : > { %1113 = vst [vmem:[#allocation2 + $0x8] sm:$0xff] %v1111_v53  ;;  %v1794_v0 = vor.u32 %v1869_v50, %v1793_v11  ;;  %v1798_v2 = vor.u32 %v1868_v55, %v1795_v63 }
 0x37d   : > { %v1099_v22 = vpop.permute.xlu1 %1098 }
 0x37e   : > { %v1102_v14 = vsel %vm273_vm6, %v2516_v25, %v1099_v22  ;;  %v1104_v15 = vsel %vm273_vm6, %v1099_v22, %v2516_v25  ;;  %1382 = vmatpush.bf16.msra.mxu0 %v1754_v62  ;;  %1399 = vmatpush.bf16.msra.mxu2 %v1794_v0  ;;  %v1854_v25 = vld [vmem:[#allocation2 + $0x14] sm:$0xf] }
 0x37f   : > { %v1106_v17 = vmul.f32 %v1104_v15, %v2167_v26  ;;  %v1107_v58 = vmul.f32 %v1102_v14, %v2170_v32  ;;  %1410 = vmatpush.bf16.msra.mxu1 %v1758_v1  ;;  %1427 = vmatpush.bf16.msra.mxu3 %v1798_v2 }
 0x381   : > { %v1110_v23 = vpack.c.bf16 %v1107_v58, %v1106_v17  ;;  %1799 = vmatmul.msk.bf16.vlgmr.msra.gmra.mxu2 %vm583_vm8, %v1726_v13 }
 0x382   : > { %1383 = vmatpush.bf16.msra.mxu0 %v1746_v19  ;;  %1800 = vmatmul.msk.bf16.vlgmr.msra.gmra.mxu3 %vm583_vm8, %v1726_v13  ;;  %v1855_v7 = vld [vmem:[#allocation2 + $0x14] sm:$0xf0]  ;;  %v1739_v4 = vld [vmem:[#allocation2 + $0x18] sm:$0xf0] }
 0x383   : > { %1112 = vst [vmem:[#allocation2] sm:$0xff] %v1110_v23  ;;  %1411 = vmatpush.bf16.msra.mxu1 %v1750_v29  ;;  %v1738_v26 = vor.u32 %v1855_v7, %v1737_v24  ;;  %v1742_v32 = vor.u32 %v1854_v25, %v1739_v4  ;;  %v1853_v33 = vld [vmem:[#allocation2 + $0x4] sm:$0xf0]  ;;  %v1731_v31 = vld [vmem:[#allocation2 + $0x8] sm:$0xf0] }
 0x386   : > { %1384 = vmatpush.bf16.msra.mxu0 %v1738_v26 }
 0x387   : > { %1412 = vmatpush.bf16.msra.mxu1 %v1742_v32 }
 0x38a   : > { %v1729_v30 = vld [vmem:[#allocation2] sm:$0xf]  ;;  %v1852_v36 = vld [vmem:[#allocation2 + $0x4] sm:$0xf] }
 0x38b   : > { %v1730_v44 = vor.u32 %v1853_v33, %v1729_v30  ;;  %v1734_v56 = vor.u32 %v1852_v36, %v1731_v31 }
 0x38d   : > { %1385 = vmatpush.bf16.msra.mxu0 %v1730_v44  ;;  %1413 = vmatpush.bf16.msra.mxu1 %v1734_v56 }
 0x390   : > { %1386 = vmatmul.bf16.vlgmr.msra.gmra.mxu0 %v1722_v39  ;;  %1414 = vmatmul.bf16.vlgmr.msra.gmra.mxu1 %v1722_v39 }
 0x404   : > { %v1401_v54 = vpop.f32.mrf.mxu2 }
 0x405   : > { %v1429_v28 = vpop.f32.mrf.mxu3 }
 0x40c   : > { %v1403_v59 = vpop.f32.mrf.mxu2 }
 0x40d   : > { %v1387_v8 = vpop.f32.mrf.mxu0  ;;  %v1415_v40 = vpop.f32.mrf.mxu1 }
 0x40e   : > { %v1431_v60 = vpop.f32.mrf.mxu3  ;;  %v1402_v41 = vadd.f32 %v1401_v54, %v1387_v8  ;;  %v1430_v42 = vadd.f32 %v1429_v28, %v1415_v40 }
 0x415   : > { %v1389_v47 = vpop.f32.mrf.mxu0  ;;  %v1417_v9 = vpop.f32.mrf.mxu1 }
 0x416   : > { %v1404_v43 = vadd.f32 %v1403_v59, %v1389_v47  ;;  %v1432_v48 = vadd.f32 %v1431_v60, %v1417_v9 }
 0x418   : > { %v1434_v51 = vpack.c.bf16 %v1404_v43, %v1402_v41  ;;  %v1435_v52 = vpack.c.bf16 %v1432_v48, %v1430_v42 }
 0x41a   : > { %1443 = vmatpush.bf16.msrb.mxu2 %v1434_v51  ;;  %1456 = vmatpush.bf16.msrb.mxu3 %v1435_v52 }
 0x41d   : > { %1801 = vmatmul.msk.bf16.vlgmr.msrb.gmra.mxu2 %vm583_vm8, %v1891_v27  ;;  %1802 = vmatmul.msk.bf16.vlgmr.msrb.gmra.mxu3 %vm583_vm8, %v1891_v27 }
 0x4a0   : > { %v1445_v37 = vpop.f32.mrf.mxu2  ;;  %v1458_v35 = vpop.f32.mrf.mxu3 }
 0x4a1   : > { %v1462_v45 = vmax.f32 %v1445_v37, 0.0  ;;  %v1463_v46 = vmax.f32 %v1458_v35, 0.0 }
 0x4a3   : > { %v1465_v10 = vadd.f32 %v1463_v46, %v2518_v38  ;;  %v1464_v11 = vadd.f32 %v1462_v45, %v2512_v20 }
 0x4a5   : > { %v1468_v3 = vrot.slane %v1465_v10, 4 }
 0x4a7   : > { %v1470_v55 = vsel %vm1469_vm9, %v1464_v11, %v1468_v3 }
 0x4a8   : > { %1472 = vst [vmem:[%s251_s14] sm:$0xff] %v1470_v55  ;;  %v1447_v5 = vpop.f32.mrf.mxu2  ;;  %v1460_v53 = vpop.f32.mrf.mxu3 }
 0x4a9 PF: > { %s16_s21 = sadd.s32 1, %s1898_s21  }
 0x4aa   : > { %p13_p4 = scmp.ge.s32.totalorder %s16_s21, 4  }
 0x4ac   :  { %15 = sbr.rel (!%p13_p4) target bundleno = 1 (0x1), region = 74 }

</bundles_post_ra>
